<compile_context>
chip_gen: v7x
topology: tpu7x:2x2x1
jax: 0.10.0
libtpu: 0.0.40
codegen_flags: <defaults>
</compile_context>

<pallas_src>
import functools
import math

import jax
import jax.numpy as jnp
from jax import lax
from jax.experimental import pallas as pl
from jax.experimental.pallas import tpu as pltpu


def _gelu_tanh(x):
    c = math.sqrt(2.0 / math.pi)
    return 0.5 * x * (1.0 + jnp.tanh(c * (x + 0.044715 * x * x * x)))


# ---------------------------------------------------------------------------
# Kernel 1: pre (1x1) -> DDSConv (n_layers) -> proj (1x1), channels-last.
# ---------------------------------------------------------------------------
def _convflow_hidden_kernel(x_ref, m_ref, prew_ref, preb_ref,
                            dww_ref, dwb_ref, g1_ref, b1_ref,
                            pww_ref, pwb_ref, g2_ref, b2_ref,
                            projw_ref, projb_ref, o_ref, pad_ref, *,
                            n_layers, kernel_size, dilations, tt, halo, maxp,
                            eps):
    W = tt + 2 * halo
    x = x_ref[0, 0]                      # (W, half)
    m = m_ref[0, 0]                      # (W, 1)

    # pre 1x1 conv: single MXU matmul.
    h = jnp.dot(x, prew_ref[...], preferred_element_type=jnp.float32)
    h = h + preb_ref[...]

    # Zero the scratch once per step; only the center is overwritten later so
    # the border rows stay zero (replaces concatenate-based zero padding).
    pad_ref[...] = jnp.zeros_like(pad_ref)

    center = (kernel_size - 1) // 2
    for i in range(n_layers):
        d = dilations[i]
        a = h * m                                        # masked conv input
        pad_ref[pl.ds(maxp, W), :] = a
        dw = dww_ref[i]                                  # (K, C) depthwise taps
        y = jnp.zeros_like(h)
        for k in range(kernel_size):
            off = maxp + (k - center) * d                # static offset
            tap = pad_ref[pl.ds(off, W), :]              # (W, C)
            y = y + tap * dw[k:k + 1, :]
        y = y + dwb_ref[i]
        # LayerNorm over channels (lane axis)
        mu = jnp.mean(y, axis=-1, keepdims=True)
        var = jnp.mean((y - mu) ** 2, axis=-1, keepdims=True)
        y = (y - mu) * lax.rsqrt(var + eps) * g1_ref[i] + b1_ref[i]
        y = _gelu_tanh(y)
        # 1x1 conv: single MXU matmul
        y = jnp.dot(y, pww_ref[i], preferred_element_type=jnp.float32)
        y = y + pwb_ref[i]
        mu = jnp.mean(y, axis=-1, keepdims=True)
        var = jnp.mean((y - mu) ** 2, axis=-1, keepdims=True)
        y = (y - mu) * lax.rsqrt(var + eps) * g2_ref[i] + b2_ref[i]
        y = _gelu_tanh(y)
        h = h + y                                        # residual

    h = h * m
    out = jnp.dot(h, projw_ref[...], preferred_element_type=jnp.float32)
    out = (out + projb_ref[...]) * m
    # Write only the interior TT rows (halo rows are owned by neighbor tiles).
    o_ref[0] = out[halo:halo + tt, :].astype(o_ref.dtype)


# ---------------------------------------------------------------------------
# Kernel 2: piecewise rational quadratic spline with linear tails.
# ---------------------------------------------------------------------------
def _rqs_kernel(x_ref, uw_ref, uh_ref, ud_ref, y_ref, lad_ref, *,
                num_bins, tail_bound, min_bin_width, min_bin_height,
                min_derivative):
    nb = num_bins
    x = x_ref[0]                          # (Nt, 1)
    uw = uw_ref[0]                        # (Nt, nb)
    uh = uh_ref[0]                        # (Nt, nb)
    ud = ud_ref[0]                        # (Nt, nb-1)
    nt = x.shape[0]
    left = -tail_bound
    right = tail_bound

    inside = jnp.logical_and(x >= left, x <= right)
    xs = jnp.clip(x, left, right)         # safe spline argument

    def _bins(u, min_w):
        # softmax over bins + min-width affine (matches transforms.py)
        mx = jnp.max(u, axis=-1, keepdims=True)
        e = jnp.exp(u - mx)
        w = e / jnp.sum(e, axis=-1, keepdims=True)
        w = min_w + (1.0 - min_w * nb) * w
        # Cumulative knot positions via an unrolled masked sum (no cumsum /
        # concatenate inside the kernel).
        col = lax.broadcasted_iota(jnp.int32, (nt, nb + 1), 1)
        c = jnp.zeros((nt, nb + 1), jnp.float32)
        for j in range(nb):
            c = c + w[:, j:j + 1] * (col > j).astype(jnp.float32)
        c = (right - left) * c + left
        c = jnp.where(col == 0, left, jnp.where(col == nb, right, c))
        return c, c[:, 1:] - c[:, :-1]    # knots (Nt, nb+1), bin sizes (Nt, nb)

    cw, widths = _bins(uw, min_bin_width)
    ch, heights = _bins(uh, min_bin_height)
    delta = heights / widths

    # Interior knot derivatives; boundary knots have derivative
    # min_derivative + softplus(log(exp(1 - min_derivative) - 1)) == 1.0
    d_inner = min_derivative + jnp.log(1.0 + jnp.exp(ud))     # (Nt, nb-1)
    const = math.log(math.exp(1.0 - min_derivative) - 1.0)
    edge = float(min_derivative + math.log1p(math.exp(const)))

    # bucketize (searchsorted) via comparisons
    ge = (xs >= cw).astype(jnp.int32)
    bin_idx = jnp.clip(jnp.sum(ge, axis=-1, keepdims=True) - 1, 0, nb - 1)

    colb = lax.broadcasted_iota(jnp.int32, (nt, nb), 1)
    onehot = (colb == bin_idx).astype(jnp.float32)

    def sel(a):                            # per-row gather as masked sum
        return jnp.sum(a * onehot, axis=-1, keepdims=True)

    in_cw = sel(cw[:, :nb])
    in_w = sel(widths)
    in_ch = sel(ch[:, :nb])
    in_h = sel(heights)
    in_d = sel(delta)

    cold = lax.broadcasted_iota(jnp.int32, (nt, nb - 1), 1)
    dv_lo = jnp.sum(d_inner * (cold == (bin_idx - 1)).astype(jnp.float32),
                    axis=-1, keepdims=True)
    dv_hi = jnp.sum(d_inner * (cold == bin_idx).astype(jnp.float32),
                    axis=-1, keepdims=True)
    in_dv = jnp.where(bin_idx == 0, edge, dv_lo)
    in_dv1 = jnp.where(bin_idx == nb - 1, edge, dv_hi)

    theta = (xs - in_cw) / in_w
    t1m = theta * (1.0 - theta)
    numer = in_h * (in_d * theta * theta + in_dv * t1m)
    denom = in_d + (in_dv + in_dv1 - 2.0 * in_d) * t1m
    y_sp = in_ch + numer / denom
    dnum = (in_d * in_d) * (in_dv1 * theta * theta + 2.0 * in_d * t1m
                            + in_dv * (1.0 - theta) * (1.0 - theta))
    lad_sp = jnp.log(dnum) - 2.0 * jnp.log(denom)

    y_ref[0] = jnp.where(inside, y_sp, x).astype(y_ref.dtype)
    lad_ref[0] = jnp.where(inside, lad_sp,
                           jnp.zeros_like(lad_sp)).astype(lad_ref.dtype)


# ---------------------------------------------------------------------------
# Wrapper (layout glue + pallas_call plumbing)
# ---------------------------------------------------------------------------
def convflow_forward(x, x_mask, params, *, filter_channels, kernel_size,
                     n_layers, num_bins, tail_bound, time_tile, spline_tile):
    """x: (B, in_channels, T); x_mask: (B, 1, T).  Returns (x_out, logdet)."""
    B, in_channels, T = x.shape
    half = in_channels // 2
    FC = filter_channels
    K = kernel_size
    OUT = half * (num_bins * 3 - 1)

    x0 = x[:, :half, :]
    x1 = x[:, half:, :]

    # channels-last layouts (channels -> lanes)
    x0_btc = jnp.transpose(x0, (0, 2, 1))                    # (B, T, half)
    mask_bt1 = jnp.transpose(x_mask, (0, 2, 1))              # (B, T, 1)

    dil = [K ** i for i in range(n_layers)]
    pads = [(K * d - d) // 2 for d in dil]
    halo = sum(pads)
    maxp = max(pads)

    TT = time_tile
    assert T % TT == 0, "T must be divisible by time_tile"
    ntiles = T // TT
    W = TT + 2 * halo

    # Unfold overlapping halo windows in the wrapper (the per-tile DMA then
    # carries its own halo; interior tiles get true neighbor data, sequence
    # boundaries get zeros which matches Conv1d "same" zero padding of x*mask).
    x0_ext = jnp.pad(x0_btc, ((0, 0), (halo, halo), (0, 0)))
    m_ext = jnp.pad(mask_bt1, ((0, 0), (halo, halo), (0, 0)))
    idx = jnp.arange(ntiles)[:, None] * TT + jnp.arange(W)[None, :]
    x0_win = x0_ext[:, idx, :]                               # (B, ntiles, W, half)
    m_win = m_ext[:, idx, :]                                 # (B, ntiles, W, 1)

    # parameters in kernel layout (in-channel x out-channel matmul matrices)
    pre_w_t = jnp.transpose(params["pre_w"][:, :, 0])        # (half, FC)
    pre_b2 = params["pre_b"].reshape(1, FC)
    dww = jnp.transpose(params["dw_w"][:, :, 0, :], (0, 2, 1))   # (L, K, FC)
    dwb = params["dw_b"].reshape(n_layers, 1, FC)
    g1 = params["ln1_g"].reshape(n_layers, 1, FC)
    b1 = params["ln1_b"].reshape(n_layers, 1, FC)
    pww = jnp.transpose(params["pw_w"][:, :, :, 0], (0, 2, 1))   # (L, FC, FC)
    pwb = params["pw_b"].reshape(n_layers, 1, FC)
    g2 = params["ln2_g"].reshape(n_layers, 1, FC)
    b2 = params["ln2_b"].reshape(n_layers, 1, FC)
    projw_t = jnp.transpose(params["proj_w"][:, :, 0])       # (FC, OUT)
    projb2 = params["proj_b"].reshape(1, OUT)

    const2 = lambda b, t: (0, 0)
    const3 = lambda b, t: (0, 0, 0)

    param_bytes = 4 * sum(int(a.size) for a in
                          (pre_w_t, pre_b2, dww, dwb, g1, b1, pww, pwb, g2, b2,
                           projw_t, projb2))
    flops = (2 * B * T * (half * FC + n_layers * (K * FC + FC * FC) + FC * OUT)
             + 30 * B * T * FC * n_layers)
    cost = pl.CostEstimate(
        flops=int(flops),
        transcendentals=int(2 * B * T * FC * n_layers),
        bytes_accessed=int(4 * (int(x0_win.size) + int(m_win.size) + B * T * OUT)
                           + param_bytes))

    hidden_kernel = functools.partial(
        _convflow_hidden_kernel, n_layers=n_layers, kernel_size=K,
        dilations=tuple(dil), tt=TT, halo=halo, maxp=maxp, eps=1e-5)

    h = pl.pallas_call(
        hidden_kernel,
        out_shape=jax.ShapeDtypeStruct((B, T, OUT), jnp.float32),
        grid_spec=pltpu.PrefetchScalarGridSpec(
            num_scalar_prefetch=0,
            grid=(B, ntiles),
            in_specs=[
                pl.BlockSpec((1, 1, W, half), lambda b, t: (b, t, 0, 0)),
                pl.BlockSpec((1, 1, W, 1), lambda b, t: (b, t, 0, 0)),
                pl.BlockSpec((half, FC), const2),
                pl.BlockSpec((1, FC), const2),
                pl.BlockSpec((n_layers, K, FC), const3),
                pl.BlockSpec((n_layers, 1, FC), const3),
                pl.BlockSpec((n_layers, 1, FC), const3),
                pl.BlockSpec((n_layers, 1, FC), const3),
                pl.BlockSpec((n_layers, FC, FC), const3),
                pl.BlockSpec((n_layers, 1, FC), const3),
                pl.BlockSpec((n_layers, 1, FC), const3),
                pl.BlockSpec((n_layers, 1, FC), const3),
                pl.BlockSpec((FC, OUT), const2),
                pl.BlockSpec((1, OUT), const2),
            ],
            out_specs=pl.BlockSpec((1, TT, OUT), lambda b, t: (b, t, 0)),
            scratch_shapes=[pltpu.VMEM((W + 2 * maxp, FC), jnp.float32)],
        ),
        compiler_params=pltpu.CompilerParams(
            dimension_semantics=("parallel", "parallel"),
            vmem_limit_bytes=48 * 1024 * 1024),
        cost_estimate=cost,
    )(x0_win, m_win, pre_w_t, pre_b2, dww, dwb, g1, b1, pww, pwb, g2, b2,
      projw_t, projb2)

    # Spline parameter plumbing (matches h.reshape(b,c,-1,t).permute(0,1,3,2)).
    nb = num_bins
    h4 = h.reshape(B, T, half, 3 * nb - 1)
    h4 = jnp.transpose(h4, (0, 2, 1, 3))                     # (B, half, T, 3nb-1)
    scale = 1.0 / math.sqrt(FC)
    N = half * T
    uwf = (h4[..., :nb] * scale).reshape(B, N, nb)
    uhf = (h4[..., nb:2 * nb] * scale).reshape(B, N, nb)
    udf = h4[..., 2 * nb:].reshape(B, N, nb - 1)             # NOT scaled (as in torch)
    x1_flat = x1.reshape(B, N, 1)

    NT = spline_tile if spline_tile is not None else N
    assert N % NT == 0

    rqs_kernel = functools.partial(
        _rqs_kernel, num_bins=nb, tail_bound=tail_bound,
        min_bin_width=1e-3, min_bin_height=1e-3, min_derivative=1e-3)

    y_flat, lad_flat = pl.pallas_call(
        rqs_kernel,
        out_shape=(jax.ShapeDtypeStruct((B, N, 1), jnp.float32),
                   jax.ShapeDtypeStruct((B, N, 1), jnp.float32)),
        grid_spec=pltpu.PrefetchScalarGridSpec(
            num_scalar_prefetch=0,
            grid=(B, N // NT),
            in_specs=[
                pl.BlockSpec((1, NT, 1), lambda b, n: (b, n, 0)),
                pl.BlockSpec((1, NT, nb), lambda b, n: (b, n, 0)),
                pl.BlockSpec((1, NT, nb), lambda b, n: (b, n, 0)),
                pl.BlockSpec((1, NT, nb - 1), lambda b, n: (b, n, 0)),
            ],
            out_specs=[
                pl.BlockSpec((1, NT, 1), lambda b, n: (b, n, 0)),
                pl.BlockSpec((1, NT, 1), lambda b, n: (b, n, 0)),
            ],
        ),
        compiler_params=pltpu.CompilerParams(
            dimension_semantics=("parallel", "parallel"),
            vmem_limit_bytes=48 * 1024 * 1024),
    )(x1_flat, uwf, uhf, udf)

    x1_out = y_flat.reshape(B, half, T)
    lad = lad_flat.reshape(B, half, T)

    x_out = jnp.concatenate([x0, x1_out], axis=1) * x_mask
    logdet = jnp.sum(lad * x_mask, axis=(1, 2))
    return x_out, logdet


# ---------------------------------------------------------------------------
# Pure-JAX reference (mirrors the PyTorch module, NCT layout).
# ---------------------------------------------------------------------------
def _ln_nct(x, gamma, beta, eps=1e-5):
    xt = jnp.transpose(x, (0, 2, 1))
    mu = jnp.mean(xt, axis=-1, keepdims=True)
    var = jnp.mean((xt - mu) ** 2, axis=-1, keepdims=True)
    xt = (xt - mu) * lax.rsqrt(var + eps) * gamma + beta
    return jnp.transpose(xt, (0, 2, 1))


def _conv1x1_nct(x, w, b):
    return jnp.einsum("oi,bit->bot", w[:, :, 0], x) + b[None, :, None]


def _ref_rqs_linear_tails(inputs, uw, uh, ud, num_bins, tail_bound,
                          min_bin_width=1e-3, min_bin_height=1e-3,
                          min_derivative=1e-3):
    left = bottom = -tail_bound
    right = top = tail_bound
    inside = (inputs >= left) & (inputs <= right)
    const = math.log(math.exp(1.0 - min_derivative) - 1.0)
    ud = jnp.pad(ud, [(0, 0)] * (ud.ndim - 1) + [(1, 1)], constant_values=const)
    xs = jnp.clip(inputs, left, right)

    def knots(u, min_w, lo, hi):
        w = jax.nn.softmax(u, axis=-1)
        w = min_w + (1.0 - min_w * num_bins) * w
        c = jnp.cumsum(w, axis=-1)
        c = jnp.pad(c, [(0, 0)] * (c.ndim - 1) + [(1, 0)])
        c = (hi - lo) * c + lo
        c = c.at[..., 0].set(lo).at[..., -1].set(hi)
        return c, c[..., 1:] - c[..., :-1]

    cw, widths = knots(uw, min_bin_width, left, right)
    ch, heights = knots(uh, min_bin_height, bottom, top)
    derivatives = min_derivative + jnp.log(1.0 + jnp.exp(ud))
    delta = heights / widths

    bin_idx = jnp.clip(
        jnp.sum((xs[..., None] >= cw).astype(jnp.int32), axis=-1) - 1,
        0, num_bins - 1)

    def gather(a):
        return jnp.take_along_axis(a, bin_idx[..., None], axis=-1)[..., 0]

    in_cw = gather(cw[..., :num_bins]); in_w = gather(widths)
    in_ch = gather(ch[..., :num_bins]); in_h = gather(heights)
    in_d = gather(delta)
    in_dv = gather(derivatives[..., :num_bins])
    in_dv1 = gather(derivatives[..., 1:])

    theta = (xs - in_cw) / in_w
    t1m = theta * (1.0 - theta)
    numer = in_h * (in_d * theta ** 2 + in_dv * t1m)
    denom = in_d + (in_dv + in_dv1 - 2.0 * in_d) * t1m
    y = in_ch + numer / denom
    dnum = in_d ** 2 * (in_dv1 * theta ** 2 + 2.0 * in_d * t1m
                        + in_dv * (1.0 - theta) ** 2)
    lad = jnp.log(dnum) - 2.0 * jnp.log(denom)
    y = jnp.where(inside, y, inputs)
    lad = jnp.where(inside, lad, jnp.zeros_like(lad))
    return y, lad


def _ref_convflow_forward(x, x_mask, params, *, filter_channels, kernel_size,
                          n_layers, num_bins, tail_bound):
    B, in_channels, T = x.shape
    half = in_channels // 2
    FC = filter_channels
    K = kernel_size
    x0, x1 = x[:, :half, :], x[:, half:, :]

    h = _conv1x1_nct(x0, params["pre_w"], params["pre_b"])
    for i in range(n_layers):
        d = K ** i
        pad = (K * d - d) // 2
        y = lax.conv_general_dilated(
            h * x_mask, params["dw_w"][i], window_strides=(1,),
            padding=[(pad, pad)], rhs_dilation=(d,),
            dimension_numbers=("NCH", "OIH", "NCH"), feature_group_count=FC)
        y = y + params["dw_b"][i][None, :, None]
        y = _ln_nct(y, params["ln1_g"][i], params["ln1_b"][i])
        y = _gelu_tanh(y)
        y = _conv1x1_nct(y, params["pw_w"][i][:, :, :], params["pw_b"][i])
        y = _ln_nct(y, params["ln2_g"][i], params["ln2_b"][i])
        y = _gelu_tanh(y)
        h = h + y
    h = h * x_mask
    h = _conv1x1_nct(h, params["proj_w"], params["proj_b"]) * x_mask

    b, c, t = x0.shape
    h4 = jnp.transpose(h.reshape(b, c, -1, t), (0, 1, 3, 2))   # (B, half, T, 3nb-1)
    uw = h4[..., :num_bins] / math.sqrt(FC)
    uh = h4[..., num_bins:2 * num_bins] / math.sqrt(FC)
    ud = h4[..., 2 * num_bins:]

    x1o, lad = _ref_rqs_linear_tails(x1, uw, uh, ud, num_bins, tail_bound)
    x_out = jnp.concatenate([x0, x1o], axis=1) * x_mask
    logdet = jnp.sum(lad * x_mask, axis=(1, 2))
    return x_out, logdet


if __name__ == "__main__":
    B = 2
    in_channels = 4
    filter_channels = 32
    kernel_size = 3
    n_layers = 2
    num_bins = 10
    tail_bound = 5.0
    T = 16
    half = in_channels // 2
    OUT = half * (num_bins * 3 - 1)

    key = jax.random.PRNGKey(0)
    keys = jax.random.split(key, 16)

    x = 1.5 * jax.random.normal(keys[0], (B, in_channels, T), jnp.float32)
    # force a couple of x1 values outside the tail bound to exercise linear tails
    x = x.at[0, half, 0].set(6.5).at[1, in_channels - 1, 5].set(-7.0)
    lengths = jnp.array([T, T - 4])
    x_mask = (jnp.arange(T)[None, None, :] < lengths[:, None, None]).astype(jnp.float32)

    def nrm(k, shape, s):
        return s * jax.random.normal(k, shape, jnp.float32)

    # NOTE: the PyTorch module zero-inits proj; small random values are used
    # here so the spline path is actually exercised (forward semantics hold
    # for arbitrary parameter values).
    params = {
        "pre_w": nrm(keys[1], (filter_channels, half, 1), 0.3),
        "pre_b": nrm(keys[2], (filter_channels,), 0.1),
        "dw_w": nrm(keys[3], (n_layers, filter_channels, 1, kernel_size), 0.3),
        "dw_b": nrm(keys[4], (n_layers, filter_channels), 0.1),
        "ln1_g": 1.0 + nrm(keys[5], (n_layers, filter_channels), 0.1),
        "ln1_b": nrm(keys[6], (n_layers, filter_channels), 0.1),
        "pw_w": nrm(keys[7], (n_layers, filter_channels, filter_channels, 1), 0.2),
        "pw_b": nrm(keys[8], (n_layers, filter_channels), 0.1),
        "ln2_g": 1.0 + nrm(keys[9], (n_layers, filter_channels), 0.1),
        "ln2_b": nrm(keys[10], (n_layers, filter_channels), 0.1),
        "proj_w": nrm(keys[11], (OUT, filter_channels, 1), 0.2),
        "proj_b": nrm(keys[12], (OUT,), 0.05),
    }

    x_out, logdet = convflow_forward(
        x, x_mask, params, filter_channels=filter_channels,
        kernel_size=kernel_size, n_layers=n_layers, num_bins=num_bins,
        tail_bound=tail_bound, time_tile=8, spline_tile=16)
    x_out = jax.block_until_ready(x_out)
    logdet = jax.block_until_ready(logdet)

    ref_x, ref_logdet = _ref_convflow_forward(
        x, x_mask, params, filter_channels=filter_channels,
        kernel_size=kernel_size, n_layers=n_layers, num_bins=num_bins,
        tail_bound=tail_bound)

    assert x_out.shape == x.shape and logdet.shape == (B,)
    assert jnp.allclose(x_out, ref_x, atol=2e-3, rtol=2e-3), "x_out mismatch"
    assert jnp.allclose(logdet, ref_logdet, atol=5e-3, rtol=5e-3), "logdet mismatch"

    print("KERNEL_OK")
</pallas_src>

<mosaic_0001>
module attributes {stable_mosaic.version = 11 : i64} {
  func.func @_convflow_hidden_kernel(%arg0: i32, %arg1: i32, %arg2: memref<1x1x16x2xf32, #tpu.memory_space<vmem>>, %arg3: memref<1x1x16x1xf32, #tpu.memory_space<vmem>>, %arg4: memref<2x32xf32, #tpu.memory_space<vmem>>, %arg5: memref<1x32xf32, #tpu.memory_space<vmem>>, %arg6: memref<2x3x32xf32, #tpu.memory_space<vmem>>, %arg7: memref<2x1x32xf32, #tpu.memory_space<vmem>>, %arg8: memref<2x1x32xf32, #tpu.memory_space<vmem>>, %arg9: memref<2x1x32xf32, #tpu.memory_space<vmem>>, %arg10: memref<2x32x32xf32, #tpu.memory_space<vmem>>, %arg11: memref<2x1x32xf32, #tpu.memory_space<vmem>>, %arg12: memref<2x1x32xf32, #tpu.memory_space<vmem>>, %arg13: memref<2x1x32xf32, #tpu.memory_space<vmem>>, %arg14: memref<32x58xf32, #tpu.memory_space<vmem>>, %arg15: memref<1x58xf32, #tpu.memory_space<vmem>>, %arg16: memref<1x8x58xf32, #tpu.memory_space<vmem>>, %arg17: memref<22x32xf32, #tpu.memory_space<vmem>>) attributes {dimension_semantics = [#tpu.dimension_semantics<parallel>, #tpu.dimension_semantics<parallel>], iteration_bounds = array<i64: 2, 2>, scalar_prefetch = 0 : i64, scratch_operands = 1 : i64, tpu.core_type = #tpu.core_type<tc>, window_params = [{transform_indices = @transform_0, window_bounds = array<i64: 1, 1, 16, 2>}, {transform_indices = @transform_1, window_bounds = array<i64: 1, 1, 16, 1>}, {pipeline_mode = #tpu.pipeline_mode<synchronous>, transform_indices = @transform_2, window_bounds = array<i64: 2, 32>}, {pipeline_mode = #tpu.pipeline_mode<synchronous>, transform_indices = @transform_3, window_bounds = array<i64: 1, 32>}, {pipeline_mode = #tpu.pipeline_mode<synchronous>, transform_indices = @transform_4, window_bounds = array<i64: 2, 3, 32>}, {pipeline_mode = #tpu.pipeline_mode<synchronous>, transform_indices = @transform_5, window_bounds = array<i64: 2, 1, 32>}, {pipeline_mode = #tpu.pipeline_mode<synchronous>, transform_indices = @transform_6, window_bounds = array<i64: 2, 1, 32>}, {pipeline_mode = #tpu.pipeline_mode<synchronous>, transform_indices = @transform_7, window_bounds = array<i64: 2, 1, 32>}, {pipeline_mode = #tpu.pipeline_mode<synchronous>, transform_indices = @transform_8, window_bounds = array<i64: 2, 32, 32>}, {pipeline_mode = #tpu.pipeline_mode<synchronous>, transform_indices = @transform_9, window_bounds = array<i64: 2, 1, 32>}, {pipeline_mode = #tpu.pipeline_mode<synchronous>, transform_indices = @transform_10, window_bounds = array<i64: 2, 1, 32>}, {pipeline_mode = #tpu.pipeline_mode<synchronous>, transform_indices = @transform_11, window_bounds = array<i64: 2, 1, 32>}, {pipeline_mode = #tpu.pipeline_mode<synchronous>, transform_indices = @transform_12, window_bounds = array<i64: 32, 58>}, {pipeline_mode = #tpu.pipeline_mode<synchronous>, transform_indices = @transform_13, window_bounds = array<i64: 1, 58>}, {transform_indices = @transform_14, window_bounds = array<i64: 1, 8, 58>}]} {
    %c0 = arith.constant 0 : index
    %c0_0 = arith.constant 0 : index
    %c0_1 = arith.constant 0 : index
    %c0_2 = arith.constant 0 : index
    %0 = vector.load %arg2[%c0, %c0_0, %c0_1, %c0_2] : memref<1x1x16x2xf32, #tpu.memory_space<vmem>>, vector<1x1x16x2xf32>
    %1 = vector.shape_cast %0 : vector<1x1x16x2xf32> to vector<16x2xf32>
    %c0_3 = arith.constant 0 : index
    %c0_4 = arith.constant 0 : index
    %c0_5 = arith.constant 0 : index
    %c0_6 = arith.constant 0 : index
    %2 = vector.load %arg3[%c0_3, %c0_4, %c0_5, %c0_6] : memref<1x1x16x1xf32, #tpu.memory_space<vmem>>, vector<1x1x16x1xf32>
    %3 = vector.shape_cast %2 : vector<1x1x16x1xf32> to vector<16x1xf32>
    %c0_7 = arith.constant 0 : index
    %c0_8 = arith.constant 0 : index
    %4 = vector.load %arg4[%c0_7, %c0_8] : memref<2x32xf32, #tpu.memory_space<vmem>>, vector<2x32xf32>
    %cst = arith.constant dense<0.000000e+00> : vector<16x32xf32>
    %5 = tpu.matmul %1, %4, %cst {dimension_numbers = #tpu.dot_dimension_numbers<[1], [0], [0], [1], [0, 0, 1, 1], [], []>} : vector<16x2xf32>, vector<2x32xf32>, vector<16x32xf32> -> vector<16x32xf32>
    %c0_9 = arith.constant 0 : index
    %c0_10 = arith.constant 0 : index
    %6 = vector.load %arg5[%c0_9, %c0_10] : memref<1x32xf32, #tpu.memory_space<vmem>>, vector<1x32xf32>
    %7 = vector.broadcast %6 : vector<1x32xf32> to vector<16x32xf32>
    %8 = arith.addf %5, %7 : vector<16x32xf32>
    %cst_11 = arith.constant 0.000000e+00 : f32
    %9 = vector.broadcast %cst_11 : f32 to vector<22x32xf32>
    %c0_12 = arith.constant 0 : index
    %c0_13 = arith.constant 0 : index
    %10 = vector.load %arg17[%c0_12, %c0_13] : memref<22x32xf32, #tpu.memory_space<vmem>>, vector<22x32xf32>
    tpu.vector_store %arg17[%c0_12, %c0_13], %9 {strides = array<i32>} : memref<22x32xf32, #tpu.memory_space<vmem>>, vector<22x32xf32>,
    %11 = vector.broadcast %3 : vector<16x1xf32> to vector<16x32xf32>
    %12 = arith.mulf %8, %11 : vector<16x32xf32>
    %c3 = arith.constant 3 : index
    %c0_14 = arith.constant 0 : index
    %13 = vector.load %arg17[%c3, %c0_14] : memref<22x32xf32, #tpu.memory_space<vmem>>, vector<16x32xf32>
    tpu.vector_store %arg17[%c3, %c0_14], %12 {strides = array<i32>} : memref<22x32xf32, #tpu.memory_space<vmem>>, vector<16x32xf32>,
    %c0_15 = arith.constant 0 : index
    %c0_16 = arith.constant 0 : index
    %c0_17 = arith.constant 0 : index
    %14 = vector.load %arg6[%c0_15, %c0_16, %c0_17] : memref<2x3x32xf32, #tpu.memory_space<vmem>>, vector<1x3x32xf32>
    %15 = vector.shape_cast %14 : vector<1x3x32xf32> to vector<3x32xf32>
    %cst_18 = arith.constant 0.000000e+00 : f32
    %16 = vector.broadcast %cst_18 : f32 to vector<16x32xf32>
    %c2 = arith.constant 2 : index
    %c0_19 = arith.constant 0 : index
    %17 = vector.load %arg17[%c2, %c0_19] : memref<22x32xf32, #tpu.memory_space<vmem>>, vector<16x32xf32>
    %18 = vector.extract_strided_slice %15 {offsets = [0, 0], sizes = [1, 32], strides = [1, 1]} : vector<3x32xf32> to vector<1x32xf32>
    %19 = vector.broadcast %18 : vector<1x32xf32> to vector<16x32xf32>
    %20 = arith.mulf %17, %19 : vector<16x32xf32>
    %21 = arith.addf %16, %20 : vector<16x32xf32>
    %c3_20 = arith.constant 3 : index
    %c0_21 = arith.constant 0 : index
    %22 = vector.load %arg17[%c3_20, %c0_21] : memref<22x32xf32, #tpu.memory_space<vmem>>, vector<16x32xf32>
    %23 = vector.extract_strided_slice %15 {offsets = [1, 0], sizes = [1, 32], strides = [1, 1]} : vector<3x32xf32> to vector<1x32xf32>
    %24 = vector.broadcast %23 : vector<1x32xf32> to vector<16x32xf32>
    %25 = arith.mulf %22, %24 : vector<16x32xf32>
    %26 = arith.addf %21, %25 : vector<16x32xf32>
    %c4 = arith.constant 4 : index
    %c0_22 = arith.constant 0 : index
    %27 = vector.load %arg17[%c4, %c0_22] : memref<22x32xf32, #tpu.memory_space<vmem>>, vector<16x32xf32>
    %28 = vector.extract_strided_slice %15 {offsets = [2, 0], sizes = [1, 32], strides = [1, 1]} : vector<3x32xf32> to vector<1x32xf32>
    %29 = vector.broadcast %28 : vector<1x32xf32> to vector<16x32xf32>
    %30 = arith.mulf %27, %29 : vector<16x32xf32>
    %31 = arith.addf %26, %30 : vector<16x32xf32>
    %c0_23 = arith.constant 0 : index
    %c0_24 = arith.constant 0 : index
    %c0_25 = arith.constant 0 : index
    %32 = vector.load %arg7[%c0_23, %c0_24, %c0_25] : memref<2x1x32xf32, #tpu.memory_space<vmem>>, vector<1x1x32xf32>
    %33 = vector.shape_cast %32 : vector<1x1x32xf32> to vector<1x32xf32>
    %34 = vector.broadcast %33 : vector<1x32xf32> to vector<16x32xf32>
    %35 = arith.addf %31, %34 : vector<16x32xf32>
    %cst_26 = arith.constant dense<0.000000e+00> : vector<16xf32>
    %36 = vector.multi_reduction <add>, %35, %cst_26 [1] : vector<16x32xf32> to vector<16xf32>
    %37 = vector.shape_cast %36 : vector<16xf32> to vector<16x1xf32>
    %cst_27 = arith.constant 3.200000e+01 : f32
    %38 = vector.broadcast %cst_27 : f32 to vector<16x1xf32>
    %39 = arith.divf %37, %38 : vector<16x1xf32>
    %40 = vector.broadcast %39 : vector<16x1xf32> to vector<16x32xf32>
    %41 = arith.subf %35, %40 : vector<16x32xf32>
    %42 = arith.mulf %41, %41 : vector<16x32xf32>
    %cst_28 = arith.constant dense<0.000000e+00> : vector<16xf32>
    %43 = vector.multi_reduction <add>, %42, %cst_28 [1] : vector<16x32xf32> to vector<16xf32>
    %44 = vector.shape_cast %43 : vector<16xf32> to vector<16x1xf32>
    %cst_29 = arith.constant 3.200000e+01 : f32
    %45 = vector.broadcast %cst_29 : f32 to vector<16x1xf32>
    %46 = arith.divf %44, %45 : vector<16x1xf32>
    %47 = vector.broadcast %39 : vector<16x1xf32> to vector<16x32xf32>
    %48 = arith.subf %35, %47 : vector<16x32xf32>
    %cst_30 = arith.constant 9.99999974E-6 : f32
    %49 = vector.broadcast %cst_30 : f32 to vector<16x1xf32>
    %50 = arith.addf %46, %49 : vector<16x1xf32>
    %51 = math.rsqrt %50 : vector<16x1xf32>
    %52 = vector.broadcast %51 : vector<16x1xf32> to vector<16x32xf32>
    %53 = arith.mulf %48, %52 : vector<16x32xf32>
    %c0_31 = arith.constant 0 : index
    %c0_32 = arith.constant 0 : index
    %c0_33 = arith.constant 0 : index
    %54 = vector.load %arg8[%c0_31, %c0_32, %c0_33] : memref<2x1x32xf32, #tpu.memory_space<vmem>>, vector<1x1x32xf32>
    %55 = vector.shape_cast %54 : vector<1x1x32xf32> to vector<1x32xf32>
    %56 = vector.broadcast %55 : vector<1x32xf32> to vector<16x32xf32>
    %57 = arith.mulf %53, %56 : vector<16x32xf32>
    %c0_34 = arith.constant 0 : index
    %c0_35 = arith.constant 0 : index
    %c0_36 = arith.constant 0 : index
    %58 = vector.load %arg9[%c0_34, %c0_35, %c0_36] : memref<2x1x32xf32, #tpu.memory_space<vmem>>, vector<1x1x32xf32>
    %59 = vector.shape_cast %58 : vector<1x1x32xf32> to vector<1x32xf32>
    %60 = vector.broadcast %59 : vector<1x32xf32> to vector<16x32xf32>
    %61 = arith.addf %57, %60 : vector<16x32xf32>
    %cst_37 = arith.constant 5.000000e-01 : f32
    %62 = vector.broadcast %cst_37 : f32 to vector<16x32xf32>
    %63 = arith.mulf %62, %61 : vector<16x32xf32>
    %cst_38 = arith.constant 4.471500e-02 : f32
    %64 = vector.broadcast %cst_38 : f32 to vector<16x32xf32>
    %65 = arith.mulf %64, %61 : vector<16x32xf32>
    %66 = arith.mulf %65, %61 : vector<16x32xf32>
    %67 = arith.mulf %66, %61 : vector<16x32xf32>
    %68 = arith.addf %61, %67 : vector<16x32xf32>
    %cst_39 = arith.constant 0.797884583 : f32
    %69 = vector.broadcast %cst_39 : f32 to vector<16x32xf32>
    %70 = arith.mulf %69, %68 : vector<16x32xf32>
    %71 = math.tanh %70 : vector<16x32xf32>
    %cst_40 = arith.constant 1.000000e+00 : f32
    %72 = vector.broadcast %cst_40 : f32 to vector<16x32xf32>
    %73 = arith.addf %72, %71 : vector<16x32xf32>
    %74 = arith.mulf %63, %73 : vector<16x32xf32>
    %c0_41 = arith.constant 0 : index
    %c0_42 = arith.constant 0 : index
    %c0_43 = arith.constant 0 : index
    %75 = vector.load %arg10[%c0_41, %c0_42, %c0_43] : memref<2x32x32xf32, #tpu.memory_space<vmem>>, vector<1x32x32xf32>
    %76 = vector.shape_cast %75 : vector<1x32x32xf32> to vector<32x32xf32>
    %cst_44 = arith.constant dense<0.000000e+00> : vector<16x32xf32>
    %77 = tpu.matmul %74, %76, %cst_44 {dimension_numbers = #tpu.dot_dimension_numbers<[1], [0], [0], [1], [0, 0, 1, 1], [], []>} : vector<16x32xf32>, vector<32x32xf32>, vector<16x32xf32> -> vector<16x32xf32>
    %c0_45 = arith.constant 0 : index
    %c0_46 = arith.constant 0 : index
    %c0_47 = arith.constant 0 : index
    %78 = vector.load %arg11[%c0_45, %c0_46, %c0_47] : memref<2x1x32xf32, #tpu.memory_space<vmem>>, vector<1x1x32xf32>
    %79 = vector.shape_cast %78 : vector<1x1x32xf32> to vector<1x32xf32>
    %80 = vector.broadcast %79 : vector<1x32xf32> to vector<16x32xf32>
    %81 = arith.addf %77, %80 : vector<16x32xf32>
    %cst_48 = arith.constant dense<0.000000e+00> : vector<16xf32>
    %82 = vector.multi_reduction <add>, %81, %cst_48 [1] : vector<16x32xf32> to vector<16xf32>
    %83 = vector.shape_cast %82 : vector<16xf32> to vector<16x1xf32>
    %cst_49 = arith.constant 3.200000e+01 : f32
    %84 = vector.broadcast %cst_49 : f32 to vector<16x1xf32>
    %85 = arith.divf %83, %84 : vector<16x1xf32>
    %86 = vector.broadcast %85 : vector<16x1xf32> to vector<16x32xf32>
    %87 = arith.subf %81, %86 : vector<16x32xf32>
    %88 = arith.mulf %87, %87 : vector<16x32xf32>
    %cst_50 = arith.constant dense<0.000000e+00> : vector<16xf32>
    %89 = vector.multi_reduction <add>, %88, %cst_50 [1] : vector<16x32xf32> to vector<16xf32>
    %90 = vector.shape_cast %89 : vector<16xf32> to vector<16x1xf32>
    %cst_51 = arith.constant 3.200000e+01 : f32
    %91 = vector.broadcast %cst_51 : f32 to vector<16x1xf32>
    %92 = arith.divf %90, %91 : vector<16x1xf32>
    %93 = vector.broadcast %85 : vector<16x1xf32> to vector<16x32xf32>
    %94 = arith.subf %81, %93 : vector<16x32xf32>
    %cst_52 = arith.constant 9.99999974E-6 : f32
    %95 = vector.broadcast %cst_52 : f32 to vector<16x1xf32>
    %96 = arith.addf %92, %95 : vector<16x1xf32>
    %97 = math.rsqrt %96 : vector<16x1xf32>
    %98 = vector.broadcast %97 : vector<16x1xf32> to vector<16x32xf32>
    %99 = arith.mulf %94, %98 : vector<16x32xf32>
    %c0_53 = arith.constant 0 : index
    %c0_54 = arith.constant 0 : index
    %c0_55 = arith.constant 0 : index
    %100 = vector.load %arg12[%c0_53, %c0_54, %c0_55] : memref<2x1x32xf32, #tpu.memory_space<vmem>>, vector<1x1x32xf32>
    %101 = vector.shape_cast %100 : vector<1x1x32xf32> to vector<1x32xf32>
    %102 = vector.broadcast %101 : vector<1x32xf32> to vector<16x32xf32>
    %103 = arith.mulf %99, %102 : vector<16x32xf32>
    %c0_56 = arith.constant 0 : index
    %c0_57 = arith.constant 0 : index
    %c0_58 = arith.constant 0 : index
    %104 = vector.load %arg13[%c0_56, %c0_57, %c0_58] : memref<2x1x32xf32, #tpu.memory_space<vmem>>, vector<1x1x32xf32>
    %105 = vector.shape_cast %104 : vector<1x1x32xf32> to vector<1x32xf32>
    %106 = vector.broadcast %105 : vector<1x32xf32> to vector<16x32xf32>
    %107 = arith.addf %103, %106 : vector<16x32xf32>
    %cst_59 = arith.constant 5.000000e-01 : f32
    %108 = vector.broadcast %cst_59 : f32 to vector<16x32xf32>
    %109 = arith.mulf %108, %107 : vector<16x32xf32>
    %cst_60 = arith.constant 4.471500e-02 : f32
    %110 = vector.broadcast %cst_60 : f32 to vector<16x32xf32>
    %111 = arith.mulf %110, %107 : vector<16x32xf32>
    %112 = arith.mulf %111, %107 : vector<16x32xf32>
    %113 = arith.mulf %112, %107 : vector<16x32xf32>
    %114 = arith.addf %107, %113 : vector<16x32xf32>
    %cst_61 = arith.constant 0.797884583 : f32
    %115 = vector.broadcast %cst_61 : f32 to vector<16x32xf32>
    %116 = arith.mulf %115, %114 : vector<16x32xf32>
    %117 = math.tanh %116 : vector<16x32xf32>
    %cst_62 = arith.constant 1.000000e+00 : f32
    %118 = vector.broadcast %cst_62 : f32 to vector<16x32xf32>
    %119 = arith.addf %118, %117 : vector<16x32xf32>
    %120 = arith.mulf %109, %119 : vector<16x32xf32>
    %121 = arith.addf %8, %120 : vector<16x32xf32>
    %122 = vector.broadcast %3 : vector<16x1xf32> to vector<16x32xf32>
    %123 = arith.mulf %121, %122 : vector<16x32xf32>
    %c3_63 = arith.constant 3 : index
    %c0_64 = arith.constant 0 : index
    %124 = vector.load %arg17[%c3_63, %c0_64] : memref<22x32xf32, #tpu.memory_space<vmem>>, vector<16x32xf32>
    tpu.vector_store %arg17[%c3_63, %c0_64], %123 {strides = array<i32>} : memref<22x32xf32, #tpu.memory_space<vmem>>, vector<16x32xf32>,
    %c1 = arith.constant 1 : index
    %c0_65 = arith.constant 0 : index
    %c0_66 = arith.constant 0 : index
    %125 = vector.load %arg6[%c1, %c0_65, %c0_66] : memref<2x3x32xf32, #tpu.memory_space<vmem>>, vector<1x3x32xf32>
    %126 = vector.shape_cast %125 : vector<1x3x32xf32> to vector<3x32xf32>
    %cst_67 = arith.constant 0.000000e+00 : f32
    %127 = vector.broadcast %cst_67 : f32 to vector<16x32xf32>
    %c0_68 = arith.constant 0 : index
    %c0_69 = arith.constant 0 : index
    %128 = vector.load %arg17[%c0_68, %c0_69] : memref<22x32xf32, #tpu.memory_space<vmem>>, vector<16x32xf32>
    %129 = vector.extract_strided_slice %126 {offsets = [0, 0], sizes = [1, 32], strides = [1, 1]} : vector<3x32xf32> to vector<1x32xf32>
    %130 = vector.broadcast %129 : vector<1x32xf32> to vector<16x32xf32>
    %131 = arith.mulf %128, %130 : vector<16x32xf32>
    %132 = arith.addf %127, %131 : vector<16x32xf32>
    %c3_70 = arith.constant 3 : index
    %c0_71 = arith.constant 0 : index
    %133 = vector.load %arg17[%c3_70, %c0_71] : memref<22x32xf32, #tpu.memory_space<vmem>>, vector<16x32xf32>
    %134 = vector.extract_strided_slice %126 {offsets = [1, 0], sizes = [1, 32], strides = [1, 1]} : vector<3x32xf32> to vector<1x32xf32>
    %135 = vector.broadcast %134 : vector<1x32xf32> to vector<16x32xf32>
    %136 = arith.mulf %133, %135 : vector<16x32xf32>
    %137 = arith.addf %132, %136 : vector<16x32xf32>
    %c6 = arith.constant 6 : index
    %c0_72 = arith.constant 0 : index
    %138 = vector.load %arg17[%c6, %c0_72] : memref<22x32xf32, #tpu.memory_space<vmem>>, vector<16x32xf32>
    %139 = vector.extract_strided_slice %126 {offsets = [2, 0], sizes = [1, 32], strides = [1, 1]} : vector<3x32xf32> to vector<1x32xf32>
    %140 = vector.broadcast %139 : vector<1x32xf32> to vector<16x32xf32>
    %141 = arith.mulf %138, %140 : vector<16x32xf32>
    %142 = arith.addf %137, %141 : vector<16x32xf32>
    %c1_73 = arith.constant 1 : index
    %c0_74 = arith.constant 0 : index
    %c0_75 = arith.constant 0 : index
    %143 = vector.load %arg7[%c1_73, %c0_74, %c0_75] : memref<2x1x32xf32, #tpu.memory_space<vmem>>, vector<1x1x32xf32>
    %144 = vector.shape_cast %143 : vector<1x1x32xf32> to vector<1x32xf32>
    %145 = vector.broadcast %144 : vector<1x32xf32> to vector<16x32xf32>
    %146 = arith.addf %142, %145 : vector<16x32xf32>
    %cst_76 = arith.constant dense<0.000000e+00> : vector<16xf32>
    %147 = vector.multi_reduction <add>, %146, %cst_76 [1] : vector<16x32xf32> to vector<16xf32>
    %148 = vector.shape_cast %147 : vector<16xf32> to vector<16x1xf32>
    %cst_77 = arith.constant 3.200000e+01 : f32
    %149 = vector.broadcast %cst_77 : f32 to vector<16x1xf32>
    %150 = arith.divf %148, %149 : vector<16x1xf32>
    %151 = vector.broadcast %150 : vector<16x1xf32> to vector<16x32xf32>
    %152 = arith.subf %146, %151 : vector<16x32xf32>
    %153 = arith.mulf %152, %152 : vector<16x32xf32>
    %cst_78 = arith.constant dense<0.000000e+00> : vector<16xf32>
    %154 = vector.multi_reduction <add>, %153, %cst_78 [1] : vector<16x32xf32> to vector<16xf32>
    %155 = vector.shape_cast %154 : vector<16xf32> to vector<16x1xf32>
    %cst_79 = arith.constant 3.200000e+01 : f32
    %156 = vector.broadcast %cst_79 : f32 to vector<16x1xf32>
    %157 = arith.divf %155, %156 : vector<16x1xf32>
    %158 = vector.broadcast %150 : vector<16x1xf32> to vector<16x32xf32>
    %159 = arith.subf %146, %158 : vector<16x32xf32>
    %cst_80 = arith.constant 9.99999974E-6 : f32
    %160 = vector.broadcast %cst_80 : f32 to vector<16x1xf32>
    %161 = arith.addf %157, %160 : vector<16x1xf32>
    %162 = math.rsqrt %161 : vector<16x1xf32>
    %163 = vector.broadcast %162 : vector<16x1xf32> to vector<16x32xf32>
    %164 = arith.mulf %159, %163 : vector<16x32xf32>
    %c1_81 = arith.constant 1 : index
    %c0_82 = arith.constant 0 : index
    %c0_83 = arith.constant 0 : index
    %165 = vector.load %arg8[%c1_81, %c0_82, %c0_83] : memref<2x1x32xf32, #tpu.memory_space<vmem>>, vector<1x1x32xf32>
    %166 = vector.shape_cast %165 : vector<1x1x32xf32> to vector<1x32xf32>
    %167 = vector.broadcast %166 : vector<1x32xf32> to vector<16x32xf32>
    %168 = arith.mulf %164, %167 : vector<16x32xf32>
    %c1_84 = arith.constant 1 : index
    %c0_85 = arith.constant 0 : index
    %c0_86 = arith.constant 0 : index
    %169 = vector.load %arg9[%c1_84, %c0_85, %c0_86] : memref<2x1x32xf32, #tpu.memory_space<vmem>>, vector<1x1x32xf32>
    %170 = vector.shape_cast %169 : vector<1x1x32xf32> to vector<1x32xf32>
    %171 = vector.broadcast %170 : vector<1x32xf32> to vector<16x32xf32>
    %172 = arith.addf %168, %171 : vector<16x32xf32>
    %cst_87 = arith.constant 5.000000e-01 : f32
    %173 = vector.broadcast %cst_87 : f32 to vector<16x32xf32>
    %174 = arith.mulf %173, %172 : vector<16x32xf32>
    %cst_88 = arith.constant 4.471500e-02 : f32
    %175 = vector.broadcast %cst_88 : f32 to vector<16x32xf32>
    %176 = arith.mulf %175, %172 : vector<16x32xf32>
    %177 = arith.mulf %176, %172 : vector<16x32xf32>
    %178 = arith.mulf %177, %172 : vector<16x32xf32>
    %179 = arith.addf %172, %178 : vector<16x32xf32>
    %cst_89 = arith.constant 0.797884583 : f32
    %180 = vector.broadcast %cst_89 : f32 to vector<16x32xf32>
    %181 = arith.mulf %180, %179 : vector<16x32xf32>
    %182 = math.tanh %181 : vector<16x32xf32>
    %cst_90 = arith.constant 1.000000e+00 : f32
    %183 = vector.broadcast %cst_90 : f32 to vector<16x32xf32>
    %184 = arith.addf %183, %182 : vector<16x32xf32>
    %185 = arith.mulf %174, %184 : vector<16x32xf32>
    %c1_91 = arith.constant 1 : index
    %c0_92 = arith.constant 0 : index
    %c0_93 = arith.constant 0 : index
    %186 = vector.load %arg10[%c1_91, %c0_92, %c0_93] : memref<2x32x32xf32, #tpu.memory_space<vmem>>, vector<1x32x32xf32>
    %187 = vector.shape_cast %186 : vector<1x32x32xf32> to vector<32x32xf32>
    %cst_94 = arith.constant dense<0.000000e+00> : vector<16x32xf32>
    %188 = tpu.matmul %185, %187, %cst_94 {dimension_numbers = #tpu.dot_dimension_numbers<[1], [0], [0], [1], [0, 0, 1, 1], [], []>} : vector<16x32xf32>, vector<32x32xf32>, vector<16x32xf32> -> vector<16x32xf32>
    %c1_95 = arith.constant 1 : index
    %c0_96 = arith.constant 0 : index
    %c0_97 = arith.constant 0 : index
    %189 = vector.load %arg11[%c1_95, %c0_96, %c0_97] : memref<2x1x32xf32, #tpu.memory_space<vmem>>, vector<1x1x32xf32>
    %190 = vector.shape_cast %189 : vector<1x1x32xf32> to vector<1x32xf32>
    %191 = vector.broadcast %190 : vector<1x32xf32> to vector<16x32xf32>
    %192 = arith.addf %188, %191 : vector<16x32xf32>
    %cst_98 = arith.constant dense<0.000000e+00> : vector<16xf32>
    %193 = vector.multi_reduction <add>, %192, %cst_98 [1] : vector<16x32xf32> to vector<16xf32>
    %194 = vector.shape_cast %193 : vector<16xf32> to vector<16x1xf32>
    %cst_99 = arith.constant 3.200000e+01 : f32
    %195 = vector.broadcast %cst_99 : f32 to vector<16x1xf32>
    %196 = arith.divf %194, %195 : vector<16x1xf32>
    %197 = vector.broadcast %196 : vector<16x1xf32> to vector<16x32xf32>
    %198 = arith.subf %192, %197 : vector<16x32xf32>
    %199 = arith.mulf %198, %198 : vector<16x32xf32>
    %cst_100 = arith.constant dense<0.000000e+00> : vector<16xf32>
    %200 = vector.multi_reduction <add>, %199, %cst_100 [1] : vector<16x32xf32> to vector<16xf32>
    %201 = vector.shape_cast %200 : vector<16xf32> to vector<16x1xf32>
    %cst_101 = arith.constant 3.200000e+01 : f32
    %202 = vector.broadcast %cst_101 : f32 to vector<16x1xf32>
    %203 = arith.divf %201, %202 : vector<16x1xf32>
    %204 = vector.broadcast %196 : vector<16x1xf32> to vector<16x32xf32>
    %205 = arith.subf %192, %204 : vector<16x32xf32>
    %cst_102 = arith.constant 9.99999974E-6 : f32
    %206 = vector.broadcast %cst_102 : f32 to vector<16x1xf32>
    %207 = arith.addf %203, %206 : vector<16x1xf32>
    %208 = math.rsqrt %207 : vector<16x1xf32>
    %209 = vector.broadcast %208 : vector<16x1xf32> to vector<16x32xf32>
    %210 = arith.mulf %205, %209 : vector<16x32xf32>
    %c1_103 = arith.constant 1 : index
    %c0_104 = arith.constant 0 : index
    %c0_105 = arith.constant 0 : index
    %211 = vector.load %arg12[%c1_103, %c0_104, %c0_105] : memref<2x1x32xf32, #tpu.memory_space<vmem>>, vector<1x1x32xf32>
    %212 = vector.shape_cast %211 : vector<1x1x32xf32> to vector<1x32xf32>
    %213 = vector.broadcast %212 : vector<1x32xf32> to vector<16x32xf32>
    %214 = arith.mulf %210, %213 : vector<16x32xf32>
    %c1_106 = arith.constant 1 : index
    %c0_107 = arith.constant 0 : index
    %c0_108 = arith.constant 0 : index
    %215 = vector.load %arg13[%c1_106, %c0_107, %c0_108] : memref<2x1x32xf32, #tpu.memory_space<vmem>>, vector<1x1x32xf32>
    %216 = vector.shape_cast %215 : vector<1x1x32xf32> to vector<1x32xf32>
    %217 = vector.broadcast %216 : vector<1x32xf32> to vector<16x32xf32>
    %218 = arith.addf %214, %217 : vector<16x32xf32>
    %cst_109 = arith.constant 5.000000e-01 : f32
    %219 = vector.broadcast %cst_109 : f32 to vector<16x32xf32>
    %220 = arith.mulf %219, %218 : vector<16x32xf32>
    %cst_110 = arith.constant 4.471500e-02 : f32
    %221 = vector.broadcast %cst_110 : f32 to vector<16x32xf32>
    %222 = arith.mulf %221, %218 : vector<16x32xf32>
    %223 = arith.mulf %222, %218 : vector<16x32xf32>
    %224 = arith.mulf %223, %218 : vector<16x32xf32>
    %225 = arith.addf %218, %224 : vector<16x32xf32>
    %cst_111 = arith.constant 0.797884583 : f32
    %226 = vector.broadcast %cst_111 : f32 to vector<16x32xf32>
    %227 = arith.mulf %226, %225 : vector<16x32xf32>
    %228 = math.tanh %227 : vector<16x32xf32>
    %cst_112 = arith.constant 1.000000e+00 : f32
    %229 = vector.broadcast %cst_112 : f32 to vector<16x32xf32>
    %230 = arith.addf %229, %228 : vector<16x32xf32>
    %231 = arith.mulf %220, %230 : vector<16x32xf32>
    %232 = arith.addf %121, %231 : vector<16x32xf32>
    %233 = vector.broadcast %3 : vector<16x1xf32> to vector<16x32xf32>
    %234 = arith.mulf %232, %233 : vector<16x32xf32>
    %c0_113 = arith.constant 0 : index
    %c0_114 = arith.constant 0 : index
    %235 = vector.load %arg14[%c0_113, %c0_114] : memref<32x58xf32, #tpu.memory_space<vmem>>, vector<32x58xf32>
    %cst_115 = arith.constant dense<0.000000e+00> : vector<16x58xf32>
    %236 = tpu.matmul %234, %235, %cst_115 {dimension_numbers = #tpu.dot_dimension_numbers<[1], [0], [0], [1], [0, 0, 1, 1], [], []>} : vector<16x32xf32>, vector<32x58xf32>, vector<16x58xf32> -> vector<16x58xf32>
    %c0_116 = arith.constant 0 : index
    %c0_117 = arith.constant 0 : index
    %237 = vector.load %arg15[%c0_116, %c0_117] : memref<1x58xf32, #tpu.memory_space<vmem>>, vector<1x58xf32>
    %238 = vector.broadcast %237 : vector<1x58xf32> to vector<16x58xf32>
    %239 = arith.addf %236, %238 : vector<16x58xf32>
    %240 = vector.broadcast %3 : vector<16x1xf32> to vector<16x58xf32>
    %241 = arith.mulf %239, %240 : vector<16x58xf32>
    %242 = vector.extract_strided_slice %241 {offsets = [4, 0], sizes = [8, 58], strides = [1, 1]} : vector<16x58xf32> to vector<8x58xf32>
    %c0_118 = arith.constant 0 : index
    %c0_119 = arith.constant 0 : index
    %c0_120 = arith.constant 0 : index
    %243 = vector.load %arg16[%c0_118, %c0_119, %c0_120] : memref<1x8x58xf32, #tpu.memory_space<vmem>>, vector<1x8x58xf32>
    %244 = vector.shape_cast %243 : vector<1x8x58xf32> to vector<8x58xf32>
    %245 = vector.shape_cast %242 : vector<8x58xf32> to vector<1x8x58xf32>
    tpu.vector_store %arg16[%c0_118, %c0_119, %c0_120], %245 {strides = array<i32>} : memref<1x8x58xf32, #tpu.memory_space<vmem>>, vector<1x8x58xf32>,
    return
  }
  func.func @transform_0(%arg0: i32, %arg1: i32) -> (i32, i32, i32, i32) {
    %c0_i32 = arith.constant 0 : i32
    %c0_i32_0 = arith.constant 0 : i32
    %c0_i32_1 = arith.constant 0 : i32
    return %arg0, %arg1, %c0_i32, %c0_i32_0 : i32, i32, i32, i32
  }
  func.func @transform_1(%arg0: i32, %arg1: i32) -> (i32, i32, i32, i32) {
    %c0_i32 = arith.constant 0 : i32
    %c0_i32_0 = arith.constant 0 : i32
    %c0_i32_1 = arith.constant 0 : i32
    return %arg0, %arg1, %c0_i32, %c0_i32_0 : i32, i32, i32, i32
  }
  func.func @transform_2(%arg0: i32, %arg1: i32) -> (i32, i32) {
    %c0_i32 = arith.constant 0 : i32
    %c0_i32_0 = arith.constant 0 : i32
    %c0_i32_1 = arith.constant 0 : i32
    return %c0_i32, %c0_i32_0 : i32, i32
  }
  func.func @transform_3(%arg0: i32, %arg1: i32) -> (i32, i32) {
    %c0_i32 = arith.constant 0 : i32
    %c0_i32_0 = arith.constant 0 : i32
    %c0_i32_1 = arith.constant 0 : i32
    return %c0_i32, %c0_i32_0 : i32, i32
  }
  func.func @transform_4(%arg0: i32, %arg1: i32) -> (i32, i32, i32) {
    %c0_i32 = arith.constant 0 : i32
    %c0_i32_0 = arith.constant 0 : i32
    %c0_i32_1 = arith.constant 0 : i32
    %c0_i32_2 = arith.constant 0 : i32
    return %c0_i32, %c0_i32_0, %c0_i32_1 : i32, i32, i32
  }
  func.func @transform_5(%arg0: i32, %arg1: i32) -> (i32, i32, i32) {
    %c0_i32 = arith.constant 0 : i32
    %c0_i32_0 = arith.constant 0 : i32
    %c0_i32_1 = arith.constant 0 : i32
    %c0_i32_2 = arith.constant 0 : i32
    return %c0_i32, %c0_i32_0, %c0_i32_1 : i32, i32, i32
  }
  func.func @transform_6(%arg0: i32, %arg1: i32) -> (i32, i32, i32) {
    %c0_i32 = arith.constant 0 : i32
    %c0_i32_0 = arith.constant 0 : i32
    %c0_i32_1 = arith.constant 0 : i32
    %c0_i32_2 = arith.constant 0 : i32
    return %c0_i32, %c0_i32_0, %c0_i32_1 : i32, i32, i32
  }
  func.func @transform_7(%arg0: i32, %arg1: i32) -> (i32, i32, i32) {
    %c0_i32 = arith.constant 0 : i32
    %c0_i32_0 = arith.constant 0 : i32
    %c0_i32_1 = arith.constant 0 : i32
    %c0_i32_2 = arith.constant 0 : i32
    return %c0_i32, %c0_i32_0, %c0_i32_1 : i32, i32, i32
  }
  func.func @transform_8(%arg0: i32, %arg1: i32) -> (i32, i32, i32) {
    %c0_i32 = arith.constant 0 : i32
    %c0_i32_0 = arith.constant 0 : i32
    %c0_i32_1 = arith.constant 0 : i32
    %c0_i32_2 = arith.constant 0 : i32
    return %c0_i32, %c0_i32_0, %c0_i32_1 : i32, i32, i32
  }
  func.func @transform_9(%arg0: i32, %arg1: i32) -> (i32, i32, i32) {
    %c0_i32 = arith.constant 0 : i32
    %c0_i32_0 = arith.constant 0 : i32
    %c0_i32_1 = arith.constant 0 : i32
    %c0_i32_2 = arith.constant 0 : i32
    return %c0_i32, %c0_i32_0, %c0_i32_1 : i32, i32, i32
  }
  func.func @transform_10(%arg0: i32, %arg1: i32) -> (i32, i32, i32) {
    %c0_i32 = arith.constant 0 : i32
    %c0_i32_0 = arith.constant 0 : i32
    %c0_i32_1 = arith.constant 0 : i32
    %c0_i32_2 = arith.constant 0 : i32
    return %c0_i32, %c0_i32_0, %c0_i32_1 : i32, i32, i32
  }
  func.func @transform_11(%arg0: i32, %arg1: i32) -> (i32, i32, i32) {
    %c0_i32 = arith.constant 0 : i32
    %c0_i32_0 = arith.constant 0 : i32
    %c0_i32_1 = arith.constant 0 : i32
    %c0_i32_2 = arith.constant 0 : i32
    return %c0_i32, %c0_i32_0, %c0_i32_1 : i32, i32, i32
  }
  func.func @transform_12(%arg0: i32, %arg1: i32) -> (i32, i32) {
    %c0_i32 = arith.constant 0 : i32
    %c0_i32_0 = arith.constant 0 : i32
    %c0_i32_1 = arith.constant 0 : i32
    return %c0_i32, %c0_i32_0 : i32, i32
  }
  func.func @transform_13(%arg0: i32, %arg1: i32) -> (i32, i32) {
    %c0_i32 = arith.constant 0 : i32
    %c0_i32_0 = arith.constant 0 : i32
    %c0_i32_1 = arith.constant 0 : i32
    return %c0_i32, %c0_i32_0 : i32, i32
  }
  func.func @transform_14(%arg0: i32, %arg1: i32) -> (i32, i32, i32) {
    %c0_i32 = arith.constant 0 : i32
    %c0_i32_0 = arith.constant 0 : i32
    return %arg0, %arg1, %c0_i32 : i32, i32, i32
  }
}

</mosaic_0001>

<bundles_post_ra>
// kernel: tpu_custom_call.1
= control target key start
LH: loop header
LB: loop body
LE: loop exit
PB: predicated region body
PF: predicated region fallthrough
CT: control target
= control target key end

     0   :  { %s2106_s0 = inlined_call_operand.vmem [shape: f32[2,2,16,2], index: 0, kind: input, shape index: {}]   ;;  %s2107_s1 = inlined_call_operand.vmem [shape: f32[2,2,16,1], index: 1, kind: input, shape index: {}]   ;;  %s2108_s2 = inlined_call_operand.vmem [shape: f32[2,32], index: 2, kind: input, shape index: {}]   ;;  %s2109_s3 = inlined_call_operand.vmem [shape: f32[1,32], index: 3, kind: input, shape index: {}]   ;;  %s2110_s4 = inlined_call_operand.vmem [shape: f32[2,3,32], index: 4, kind: input, shape index: {}]   ;;  %s2111_s5 = inlined_call_operand.vmem [shape: f32[2,1,32], index: 5, kind: input, shape index: {}]   ;;  %s2112_s6 = inlined_call_operand.vmem [shape: f32[2,1,32], index: 6, kind: input, shape index: {}]   ;;  %s2113_s7 = inlined_call_operand.vmem [shape: f32[2,1,32], index: 7, kind: input, shape index: {}]   ;;  %s2114_s8 = inlined_call_operand.vmem [shape: f32[2,32,32], index: 8, kind: input, shape index: {}]   ;;  %s2115_s9 = inlined_call_operand.vmem [shape: f32[2,1,32], index: 9, kind: input, shape index: {}]   ;;  %s2116_s10 = inlined_call_operand.vmem [shape: f32[2,1,32], index: 10, kind: input, shape index: {}]   ;;  %s2117_s11 = inlined_call_operand.vmem [shape: f32[2,1,32], index: 11, kind: input, shape index: {}]   ;;  %s2118_s12 = inlined_call_operand.vmem [shape: f32[32,58], index: 12, kind: input, shape index: {}]   ;;  %s2119_s13 = inlined_call_operand.vmem [shape: f32[1,58], index: 13, kind: input, shape index: {}]   ;;  %s2120_s14 = inlined_call_operand.hbm [shape: f32[2,16,58], index: 14, kind: output, shape index: {}]  }
   0x1   :  { %2128 = sst [smem:[#allocation13_spill]] %s2108_s2 }
   0x2   :  { %2129 = sst [smem:[#allocation14_spill]] %s2120_s14 }
   0x3   :  { %19 = vsyncpa [#allocation4], 0 }
   0x4   :  { %21 = vsyncpa [#allocation4 + $0x1], 0  ;;  %s1806_s29 = smov 0   ;;  %s1808_s30 = smov 0  }
   0x5   :  { %s1810_s15 = smov 0   ;;  %s1812_s16 = smov 0  }
   0x6   :  { %s1814_s17 = smov 0   ;;  %s1816_s18 = smov 0  }
   0x7   :  { %s1818_s19 = smov 0   ;;  %s1820_s20 = smov 0  }
   0x8 LB: > { %2130 = sst [smem:[#allocation6_spill]] %s1698_s29  ;;  %s1392_s21 = sadd.s32 4294967295, %s1726_s20   ;;  %s1726_s20 = sphi %s1820_s20, %s27_s20   ;;  %s1722_s19 = sphi %s1818_s19, %s2147_s19   ;;  %s1718_s18 = sphi %s1816_s18, %s2146_s18   ;;  %s1714_s17 = sphi %s1814_s17, %s2145_s17   ;;  %s1710_s16 = sphi %s1812_s16, %s2144_s16   ;;  %s1706_s15 = sphi %s1810_s15, %s2143_s15   ;;  %s1702_s30 = sphi %s1808_s30, %s2149_s30   ;;  %s1698_s29 = sphi %s1806_s29, %s2148_s29  }
   0x9   : > { %2131 = sst [smem:[#allocation7_spill]] %s1706_s15  ;;  %s1393_s22 = sadd.s32 4294967294, %s1726_s20  }
   0xa   : > { %2132 = sst [smem:[#allocation8_spill]] %s1718_s18  ;;  %s36_s23 = sadd.s32 1, %s1718_s18 }
   0xb   : > { %2133 = sst [smem:[#allocation9_spill]] %s1722_s19  ;;  %p37_p0 = scmp.ge.s32.totalorder %s36_s23, 2 }
   0xc   : > { %s39_s24 = sadd.s32 1, %s1722_s19  ;;  %p366_p1 = scmp.ne.s32.totalorder %s1706_s15, %s1702_s30 }
   0xd   : > { %p367_p2 = scmp.eq.s32.totalorder %s1392_s21, 3  ;;  %s2151_s23 = smov (%p37_p0, %s36_s23), 0 }
   0xe   : > { %2134 = sst [smem:[#allocation10_spill]] %s2151_s23  ;;  %s2153_s24 = smov (!%p37_p0, %s39_s24), %s1722_s19 }
   0xf   : > { %s352_s25 = ssub.s32 %s1718_s18, %s2151_s23  ;;  %p1857_p3 = por %p367_p2, %p366_p1 }
  0x10   : > { %p41_p4 = scmp.ge.s32.totalorder %s2153_s24, 2  ;;  %p372_p5 = scmp.ne.s32.totalorder %s1702_s30, %s1698_s29 }
  0x11   : > { %p373_p6 = scmp.eq.s32.totalorder %s1393_s22, 3  ;;  %p1396_p7 = scmp.ge.s32.totalorder %s1726_s20, 1 }
  0x12   : > { %s2155_s24 = smov (%p41_p4, %s2153_s24), 0  ;;  %p451_p9 = scmp.lt.s32.totalorder %s1726_s20, 5 }
  0x13   : > { %2136 = sst [smem:[#allocation11_spill]] %s2155_s24  ;;  %p1866_p8 = por %p373_p6, %p372_p5 }
  0x14   : > { %s351_s28 = ssub.s32 %s1722_s19, %s2155_s24  ;;  %s356_s21 = sadd.s32 1, %s1706_s15 }
  0x15   : > { %s353_s14 = sor.u32 %s352_s25, %s351_s28  ;;  %p452_p10 = pnand %p1396_p7, %p451_p9 }
  0x16   : > { %p354_p11 = scmp.eq.s32.totalorder %s353_s14, 0  ;;  %s2139_s2 = sld [smem:[#allocation13_spill]] (!%p452_p10)  ;;  %vm547_vm0 = vcmask (!%p452_p10), 1041408   ;;  %v1728_v1 = vmov (!%p452_p10), 0   ;;  %vm540_vm1 = vcmask (!%p452_p10), 15360   ;;  %vm626_vm2 = vcmask (!%p452_p10), 261120  }
  0x17   : > { %455 = sbr.rel (%p452_p10) target bundleno = 2321 (0x911), region = 76  ;;  %p510_p12 = scmp.lt.s32.totalorder (!%p452_p10), %s1714_s17, 1  ;;  %1599 = vset.pattern.permute.xlu0 (!%p452_p10), %v1728_v1  ;;  %vm629_vm3 = vcmask (!%p452_p10), 259072   ;;  %v1729_v6 = vmov (!%p452_p10), 0.0   ;;  %v648_v8 = vlaneseq (!%p452_p10)  ;;  %v1404_v9 = vld [vmem:[%s2109_s3] ss:$0 sm:$0xff] (!%p452_p10) }
  0x18   : > { %s1875_s23 = scalar_select %p354_p11, %s1706_s15, %s356_s21  }
  0x19   : > { %p512_p13 = scmp.lt.s32.totalorder (!%p452_p10), %s1710_s16, 1  ;;  %628 = vst.msk [vmem:[#allocation2 + $0x8] sm:$0xff] (!%p452_p10), %vm626_vm2, %v1729_v6  ;;  %627 = vst.msk [vmem:[#allocation2] sm:$0xff] (!%p452_p10), %vm626_vm2, %v1729_v6  ;;  %v1901_v14 = vshrl.u32 (!%p452_p10), %v648_v8, 7  ;;  %v645_v19 = vld [vmem:[%s2110_s4] sm:$0x7] (!%p452_p10) }
  0x1a   : > { %2138 = sst [smem:[#allocation12_spill]] %s1875_s23  ;;  %630 = vst.msk [vmem:[#allocation2 + $0x10] sm:$0x3f] (!%p452_p10), %vm629_vm3, %v1729_v6  ;;  %v1408_v37 = vld [vmem:[%s2111_s5] ss:$0 sm:$0xff] (!%p452_p10)  ;;  %v749_v57 = vld [vmem:[%s2114_s8 + $0x8] sm:$0xff] (!%p452_p10) }
  0x1b   : > { %v660_v18 = vsub.s32 (!%p452_p10), 1, %v1901_v14  ;;  %v650_v20 = vsub.s32 (!%p452_p10), 0, %v1901_v14  ;;  %v670_v21 = vsub.s32 (!%p452_p10), 2, %v1901_v14  ;;  %v748_v56 = vld [vmem:[%s2114_s8] sm:$0xff] (!%p452_p10)  ;;  %v750_v58 = vld [vmem:[%s2114_s8 + $0x10] sm:$0xff] (!%p452_p10)  ;;  %v751_v60 = vld [vmem:[%s2114_s8 + $0x18] sm:$0xff] (!%p452_p10) }
  0x1c   : > { %v532_v0 = vld [vmem:[%s2139_s2] sm:$0x3] (!%p452_p10)  ;;  %v1502_v59 = vpack.c.bf16 (!%p452_p10), %v749_v57, %v748_v56  ;;  %v1506_v61 = vpack.c.bf16 (!%p452_p10), %v751_v60, %v750_v58  ;;  %vm1272_vm4 = vcmask (!%p452_p10), 470016   ;;  %vm1270_vm5 = vcmask (!%p452_p10), 474116  }
  0x1d   : > { %1464 = vmatprep.subr.msk.mxu0 (!%p452_p10), %vm547_vm0, %v532_v0  ;;  %v661_v22 = vrot.slane (!%p452_p10), %v645_v19, %v660_v18  ;;  %v651_v23 = vrot.slane (!%p452_p10), %v645_v19, %v650_v20  ;;  %v671_v24 = vrot.slane (!%p452_p10), %v645_v19, %v670_v21  ;;  %v1410_v8 = vld [vmem:[%s2113_s7] ss:$0 sm:$0xff] (!%p452_p10) }
  0x1e   : > { %1465 = vmatpush3.msk.msra.mxu0 %vm547_vm0, %v532_v0  ;;  %s511_s22 = scalar_select %p510_p12, %s1714_s17, 1  ;;  %1503 = vmatprep.subr.bf16.mxu1 %v1502_v59 }
  0x1f   : > { %s513_s14 = scalar_select %p512_p13, %s1710_s16, 1  ;;  %1505 = vmatpush3.bf16.msra.mxu1 %v1502_v59 }
  0x20   : > { %s1399_s25 = sshll.u32 %s511_s22, 2  ;;  %1507 = vmatprep.subr.bf16.mxu1 %v1506_v61 }
  0x21   : > { %s1398_s28 = sshll.u32 %s513_s14, 1  ;;  %s507_s14 = sand.u32 1, %s1702_s30  }
  0x22   : > { %s516_s21 = sadd.s32 %s1399_s25, %s1398_s28  ;;  %s1397_s25 = sshll.u32 %s507_s14, 3 }
  0x23   : > { %s1400_s24 = sshll.u32 %s516_s21, 3  ;;  %1509 = vmatpush3.bf16.msra.mxu1 %v1506_v61  ;;  %s1439_s28 = sshll.u32 %s1714_s17, 1 }
  0x24   : > { %s518_s19 = scalar_lea.vmem %s2106_s0, %s1400_s24  ;;  %s527_s15 = scalar_lea.vmem %s2107_s1, %s1400_s24 }
  0x25   : > { %v528_v2 = vld [vmem:[%s518_s19] sm:$0xff]  ;;  %v529_v3 = vld [vmem:[%s518_s19 + $0x8] sm:$0xff]  ;;  %s1286_s18 = sadd.s32 %s1710_s16, %s1439_s28  ;;  %s509_s23 = scalar_lea.vmem [#allocation3], %s1397_s25 }
  0x26   : > { %v530_v4 = vld [vmem:[%s527_s15] sm:$0xff]  ;;  %1466 = vmatprep.mubr.msk.f32.mxu0 %vm540_vm1, %v528_v2  ;;  %v531_v5 = vld [vmem:[%s527_s15 + $0x8] sm:$0xff]  ;;  %s1440_s2 = sshll.u32 %s1286_s18, 7  ;;  %s1290_s15 = sshll.u32 %s509_s23, 4  ;;  %s2055_s15 = int_to_ptr.vmem [resolvable:$true] %s1290_s15 }
  0x27   : > { %633 = vperm.xlu0 %1599, %v530_v4   ;;  %1467 = vmatmul.mubr.msk.f32.vlgmr.msra.gmra.mrb[0].mxu0 %vm540_vm1, %v529_v3  ;;  %s2140_s24 = sld [smem:[#allocation14_spill]]  ;;  %s1275_s16 = scalar_lea.sflag [#allocation4], %s507_s14 }
  0x28   : > { %s1632_s25 = scalar_lea.vmem %s2055_s15, 128  ;;  %s1730_s28 = smov [#allocation3]  }
  0x29   : > { %p1633_p0 = scmp.ne.s32.totalorder %s2055_s15, %s1632_s25  ;;  %s1636_s21 = sshll.u32 %s1730_s28, 4  ;;  %s1637_s21 = int_to_ptr.vmem [resolvable:$false] %s1636_s21 }
  0x2a   : > { %s1638_s29 = scalar_lea.vmem %s1637_s21, 256  ;;  %p1639_p4 = scmp.lt.s32.totalorder %s2055_s15, %s1637_s21 }
  0x2b   : > { %638 = vperm.xlu0 %1599, %v531_v5   ;;  %v1409_v5 = vld [vmem:[%s2112_s6] ss:$0 sm:$0xff]  ;;  %p1634_p1 = pnand %p1633_p0, %p1857_p3  ;;  %p1640_p5 = scmp.lt.s32.totalorder %s1638_s29, %s1632_s25 }
  0x2d   : > { %s2053_s22 = scalar_lea.hbm %s2140_s24, %s1440_s2  ;;  %p1635_p2 = pneg %p1634_p1 }
  0x2e   : > { %p1641_p6 = por %p1640_p5, %p1639_p4 }
  0x30   : > { %p1642_p7 = pnand %p1641_p6, %p1635_p2 }
  0xa6   : > { %v1892_v7 = vpop.permute.xlu0 %633 }
  0xaa   : > { %v1897_v11 = vpop.permute.xlu0 %638 }
  0xfa   : > { %v1468_v10 = vpop.f32.mrb[0].mxu0 }
  0xfb   : > { %v1899_v12 = vadd.f32 %v1468_v10, %v1404_v9  ;;  %v617_v13 = vpop.f32.mrb[1].mxu0 }
  0xfc   : > { %v1903_v15 = vadd.f32 %v1404_v9, %v617_v13 }
  0xfd   : > { %v642_v16 = vmul.f32 %v1897_v11, %v1899_v12 }
  0xfe   : > { %v641_v17 = vmul.f32 %v1892_v7, %v1903_v15 }
  0xff   : > { %644 = vst.msk [vmem:[#allocation2 + $0xb] sm:$0xff] %vm626_vm2, %v642_v16 }
 0x100   : > { %643 = vst.msk [vmem:[#allocation2 + $0x3] sm:$0xff] %vm626_vm2, %v641_v17 }
 0x106   : > { %v657_v25 = vld [vmem:[#allocation2 + $0xb] sm:$0xff] }
 0x107   : > { %v646_v26 = vld [vmem:[#allocation2 + $0x2] sm:$0xff]  ;;  %v663_v29 = vmul.f32 %v661_v22, %v657_v25  ;;  %v647_v32 = vld [vmem:[#allocation2 + $0xa] sm:$0xff] }
 0x108   : > { %v656_v27 = vld [vmem:[#allocation2 + $0x3] sm:$0xff]  ;;  %v652_v30 = vmul.f32 %v651_v23, %v646_v26  ;;  %v667_v33 = vld [vmem:[#allocation2 + $0xc] sm:$0xff]  ;;  %v653_v34 = vmul.f32 %v651_v23, %v647_v32 }
 0x109   : > { %v666_v28 = vld [vmem:[#allocation2 + $0x4] sm:$0xff]  ;;  %v662_v31 = vmul.f32 %v661_v22, %v656_v27  ;;  %v673_v39 = vmul.f32 %v671_v24, %v667_v33 }
 0x10a   : > { %v672_v36 = vmul.f32 %v671_v24, %v666_v28  ;;  %v665_v38 = vadd.f32 %v663_v29, %v653_v34 }
 0x10b   : > { %v664_v35 = vadd.f32 %v662_v31, %v652_v30 }
 0x10c   : > { %v675_v41 = vadd.f32 %v673_v39, %v665_v38 }
 0x10d   : > { %v674_v40 = vadd.f32 %v672_v36, %v664_v35 }
 0x10e   : > { %v684_v44 = vadd.f32 %v1408_v37, %v675_v41 }
 0x10f   : > { %v683_v42 = vadd.f32 %v1408_v37, %v674_v40  ;;  %v1411_v40 = vld [vmem:[%s2115_s9] ss:$0 sm:$0xff] }
 0x110   : > { %v688_v45 = vsel %vm626_vm2, %v684_v44, 0.0 }
 0x111   : > { %v685_v43 = vsel %vm626_vm2, %v683_v42, 0.0 }
 0x112   : > { %686 = vadd.xlane.f32.xlu1 %v685_v43 }
 0x116   : > { %689 = vadd.xlane.f32.xlu1 %v688_v45 }
 0x19f   : > { %v687_v46 = vpop.xlane.xlu1 %686 }
 0x1a0   : > { %v692_v47 = vmul.f32 0.03125, %v687_v46 }
 0x1a2   : > { %v694_v48 = vsub.f32 %v683_v42, %v692_v47 }
 0x1a3   : > { %v690_v49 = vpop.xlane.xlu1 %689 }
 0x1a4   : > { %v693_v50 = vmul.f32 0.03125, %v690_v49  ;;  %v696_v51 = vmul.f32 %v694_v48, %v694_v48 }
 0x1a6   : > { %v695_v52 = vsub.f32 %v684_v44, %v693_v50  ;;  %v698_v53 = vsel %vm626_vm2, %v696_v51, 0.0 }
 0x1a7   : > { %699 = vadd.xlane.f32.xlu0 %v698_v53 }
 0x1a8   : > { %v697_v54 = vmul.f32 %v695_v52, %v695_v52 }
 0x1aa   : > { %v701_v55 = vsel %vm626_vm2, %v697_v54, 0.0 }
 0x1ab   : > { %702 = vadd.xlane.f32.xlu1 %v701_v55 }
 0x234   : > { %v700_v62 = vpop.xlane.xlu0 %699 }
 0x235   : > { %v704_v63 = vmul.f32 0.03125, %v700_v62 }
 0x237   : > { %v706_v0 = vadd.f32 1e-05, %v704_v63 }
 0x238   : > { %v703_v1 = vpop.xlane.xlu1 %702 }
 0x239   : > { %1600 = vrsqrt.f32 %v706_v0  ;;  %v705_v2 = vmul.f32 0.03125, %v703_v1  ;;  %v1414_v0 = vld [vmem:[%s2116_s10] ss:$0 sm:$0xff] }
 0x23b   : > { %v707_v3 = vadd.f32 1e-05, %v705_v2  ;;  %v1415_v2 = vld [vmem:[%s2117_s11] ss:$0 sm:$0xff] }
 0x23d   : > { %1602 = vrsqrt.f32 %v707_v3 }
 0x243   : > { %v1601_v4 = vpop.eup %1600 }
 0x244   : > { %v710_v6 = vmul.f32 %v1601_v4, %v694_v48 }
 0x246   : > { %v719_v9 = vmul.f32 %v1409_v5, %v710_v6 }
 0x247   : > { %v1603_v10 = vpop.eup %1602 }
 0x248   : > { %v711_v13 = vmul.f32 %v1603_v10, %v695_v52  ;;  %v728_v16 = vadd.f32 %v1410_v8, %v719_v9 }
 0x24a   : > { %v720_v17 = vmul.f32 %v1409_v5, %v711_v13  ;;  %v732_v19 = vmul.f32 0.044715, %v728_v16  ;;  %v730_v33 = vmul.f32 0.5, %v728_v16 }
 0x24c   : > { %v729_v22 = vadd.f32 %v1410_v8, %v720_v17  ;;  %v734_v23 = vmul.f32 %v732_v19, %v728_v16 }
 0x24e   : > { %v736_v24 = vmul.f32 %v734_v23, %v728_v16  ;;  %v733_v25 = vmul.f32 0.044715, %v729_v22  ;;  %v731_v37 = vmul.f32 0.5, %v729_v22 }
 0x250   : > { %v738_v26 = vadd.f32 %v736_v24, %v728_v16  ;;  %v735_v27 = vmul.f32 %v733_v25, %v729_v22 }
 0x252   : > { %v740_v28 = vmul.f32 0.7978846, %v738_v26  ;;  %v737_v29 = vmul.f32 %v735_v27, %v729_v22 }
 0x254   : > { %1604 = vtanh.f32 %v740_v28  ;;  %v739_v30 = vadd.f32 %v737_v29, %v729_v22 }
 0x256   : > { %v741_v31 = vmul.f32 0.7978846, %v739_v30 }
 0x258   : > { %1606 = vtanh.f32 %v741_v31 }
 0x25e   : > { %v1605_v32 = vpop.eup %1604 }
 0x25f   : > { %v744_v34 = vadd.f32 1.0, %v1605_v32 }
 0x261   : > { %v746_v35 = vmul.f32 %v744_v34, %v730_v33 }
 0x262   : > { %v1607_v36 = vpop.eup %1606 }
 0x263   : > { %1477 = vmatprep.mubr.msk.f32.mxu1 %vm626_vm2, %v746_v35  ;;  %v745_v38 = vadd.f32 1.0, %v1607_v36 }
 0x265   : > { %v747_v39 = vmul.f32 %v745_v38, %v731_v37  ;;  %v1416_v38 = vld [vmem:[%s2110_s4 + $0x4] sm:$0x7] }
 0x267   : > { %1478 = vmatmul.mubr.msk.f32.vlgmr.msra.gmra.mrb[0].mxu1 %vm626_vm2, %v747_v39 }
 0x33a   : > { %v1479_v41 = vpop.f32.mrb[0].mxu1 }
 0x33b   : > { %v831_v42 = vpop.f32.mrb[1].mxu1  ;;  %v837_v44 = vadd.f32 %v1479_v41, %v1411_v40 }
 0x33c   : > { %v832_v43 = vadd.f32 %v1411_v40, %v831_v42  ;;  %v925_v40 = vrot.slane %v1416_v38, %v660_v18 }
 0x33d   : > { %v843_v46 = vsel %vm626_vm2, %v837_v44, 0.0 }
 0x33e   : > { %v840_v45 = vsel %vm626_vm2, %v832_v43, 0.0 }
 0x33f   : > { %841 = vadd.xlane.f32.xlu1 %v840_v45 }
 0x343   : > { %844 = vadd.xlane.f32.xlu1 %v843_v46 }
 0x3cc   : > { %v842_v47 = vpop.xlane.xlu1 %841 }
 0x3cd   : > { %v846_v48 = vmul.f32 0.03125, %v842_v47 }
 0x3cf   : > { %v848_v49 = vsub.f32 %v832_v43, %v846_v48 }
 0x3d0   : > { %v845_v50 = vpop.xlane.xlu1 %844 }
 0x3d1   : > { %v847_v51 = vmul.f32 0.03125, %v845_v50  ;;  %v850_v52 = vmul.f32 %v848_v49, %v848_v49 }
 0x3d3   : > { %v849_v53 = vsub.f32 %v837_v44, %v847_v51  ;;  %v852_v54 = vsel %vm626_vm2, %v850_v52, 0.0  ;;  %v935_v44 = vrot.slane %v1416_v38, %v670_v21 }
 0x3d4   : > { %853 = vadd.xlane.f32.xlu1 %v852_v54 }
 0x3d5   : > { %v851_v55 = vmul.f32 %v849_v53, %v849_v53 }
 0x3d7   : > { %v855_v56 = vsel %vm626_vm2, %v851_v55, 0.0 }
 0x3d8   : > { %856 = vadd.xlane.f32.xlu1 %v855_v56 }
 0x461   : > { %v854_v57 = vpop.xlane.xlu1 %853 }
 0x462   : > { %v858_v58 = vmul.f32 0.03125, %v854_v57 }
 0x464   : > { %v860_v59 = vadd.f32 1e-05, %v858_v58 }
 0x465   : > { %v857_v60 = vpop.xlane.xlu1 %856 }
 0x466   : > { %1608 = vrsqrt.f32 %v860_v59  ;;  %v859_v61 = vmul.f32 0.03125, %v857_v60 }
 0x468   : > { %v861_v62 = vadd.f32 1e-05, %v859_v61 }
 0x46a   : > { %1610 = vrsqrt.f32 %v861_v62 }
 0x470   : > { %v1609_v63 = vpop.eup %1608 }
 0x471   : > { %v864_v1 = vmul.f32 %v1609_v63, %v848_v49 }
 0x473   : > { %v873_v3 = vmul.f32 %v1414_v0, %v864_v1 }
 0x474   : > { %v1611_v4 = vpop.eup %1610 }
 0x475   : > { %v882_v5 = vadd.f32 %v1415_v2, %v873_v3  ;;  %v865_v6 = vmul.f32 %v1611_v4, %v849_v53  ;;  %v1423_v4 = vld [vmem:[%s2114_s8 + $0x20] sm:$0xff] }
 0x477   : > { %v886_v8 = vmul.f32 0.044715, %v882_v5  ;;  %v874_v9 = vmul.f32 %v1414_v0, %v865_v6  ;;  %v884_v28 = vmul.f32 0.5, %v882_v5  ;;  %v1425_v6 = vld [vmem:[%s2114_s8 + $0x30] sm:$0xff] }
 0x479   : > { %v888_v10 = vmul.f32 %v886_v8, %v882_v5  ;;  %v883_v13 = vadd.f32 %v1415_v2, %v874_v9  ;;  %v1426_v9 = vld [vmem:[%s2114_s8 + $0x38] sm:$0xff] }
 0x47b   : > { %v890_v16 = vmul.f32 %v888_v10, %v882_v5  ;;  %v887_v17 = vmul.f32 0.044715, %v883_v13  ;;  %v885_v33 = vmul.f32 0.5, %v883_v13  ;;  %v1514_v10 = vpack.c.bf16 %v1426_v9, %v1425_v6 }
 0x47d   : > { %v892_v19 = vadd.f32 %v890_v16, %v882_v5  ;;  %v889_v22 = vmul.f32 %v887_v17, %v883_v13  ;;  %v1424_v5 = vld [vmem:[%s2114_s8 + $0x28] sm:$0xff] }
 0x47e   : > { %v1510_v8 = vpack.c.bf16 %v1424_v5, %v1423_v4  ;;  %v1179_v5 = vld [vmem:[%s2118_s12 + $0x18] sm:$0xff] }
 0x47f   : > { %v894_v23 = vmul.f32 0.7978846, %v892_v19  ;;  %v891_v24 = vmul.f32 %v889_v22, %v883_v13 }
 0x480   : > { %1511 = vmatprep.subr.bf16.mxu0 %v1510_v8 }
 0x481   : > { %1612 = vtanh.f32 %v894_v23  ;;  %v893_v25 = vadd.f32 %v891_v24, %v883_v13  ;;  %1513 = vmatpush3.bf16.msra.mxu0 %v1510_v8 }
 0x482   : > { %1515 = vmatprep.subr.bf16.mxu0 %v1514_v10 }
 0x483   : > { %v895_v26 = vmul.f32 0.7978846, %v893_v25  ;;  %v1420_v25 = vld [vmem:[%s2112_s6 + $0x1] ss:$0 sm:$0xff] }
 0x485   : > { %1614 = vtanh.f32 %v895_v26  ;;  %1517 = vmatpush3.bf16.msra.mxu0 %v1514_v10 }
 0x48b   : > { %v1613_v27 = vpop.eup %1612 }
 0x48c   : > { %v898_v29 = vadd.f32 1.0, %v1613_v27  ;;  %v1422_v27 = vld [vmem:[%s2113_s7 + $0x1] ss:$0 sm:$0xff] }
 0x48e   : > { %v900_v30 = vmul.f32 %v898_v29, %v884_v28 }
 0x48f   : > { %v1615_v31 = vpop.eup %1614 }
 0x490   : > { %v1964_v32 = vadd.f32 %v900_v30, %v1903_v15  ;;  %v899_v34 = vadd.f32 1.0, %v1615_v31  ;;  %v915_v15 = vrot.slane %v1416_v38, %v650_v20  ;;  %v1418_v20 = vld [vmem:[%s2111_s5 + $0x1] ss:$0 sm:$0xff] }
 0x492   : > { %v904_v35 = vmul.f32 %v1964_v32, %v1892_v7  ;;  %v901_v36 = vmul.f32 %v899_v34, %v885_v33 }
 0x494   : > { %906 = vst.msk [vmem:[#allocation2 + $0x3] sm:$0xff] %vm626_vm2, %v904_v35  ;;  %v1970_v37 = vadd.f32 %v901_v36, %v1899_v12 }
 0x496   : > { %v905_v39 = vmul.f32 %v1970_v37, %v1897_v11 }
 0x498   : > { %907 = vst.msk [vmem:[#allocation2 + $0xb] sm:$0xff] %vm626_vm2, %v905_v39 }
 0x49b   : > { %v910_v41 = vld [vmem:[#allocation2] sm:$0xff] }
 0x49c   : > { %v920_v42 = vld [vmem:[#allocation2 + $0x3] sm:$0xff]  ;;  %v916_v43 = vmul.f32 %v915_v15, %v910_v41 }
 0x49d   : > { %v926_v12 = vmul.f32 %v925_v40, %v920_v42 }
 0x49f   : > { %v930_v45 = vld [vmem:[#allocation2 + $0x6] sm:$0xff]  ;;  %v928_v48 = vadd.f32 %v926_v12, %v916_v43  ;;  %v931_v52 = vld [vmem:[#allocation2 + $0xe] sm:$0xff] }
 0x4a0   : > { %v911_v46 = vld [vmem:[#allocation2 + $0x8] sm:$0xff]  ;;  %v936_v49 = vmul.f32 %v935_v44, %v930_v45  ;;  %v937_v54 = vmul.f32 %v935_v44, %v931_v52  ;;  %v1428_v52 = vld [vmem:[%s2115_s9 + $0x1] ss:$0 sm:$0xff] }
 0x4a1   : > { %v921_v47 = vld [vmem:[#allocation2 + $0xb] sm:$0xff]  ;;  %v917_v50 = vmul.f32 %v915_v15, %v911_v46 }
 0x4a2   : > { %v927_v51 = vmul.f32 %v925_v40, %v921_v47  ;;  %v938_v18 = vadd.f32 %v936_v49, %v928_v48 }
 0x4a4   : > { %v929_v53 = vadd.f32 %v927_v51, %v917_v50  ;;  %v948_v55 = vadd.f32 %v1418_v20, %v938_v18 }
 0x4a6   : > { %v939_v56 = vadd.f32 %v937_v54, %v929_v53  ;;  %v950_v14 = vsel %vm626_vm2, %v948_v55, 0.0 }
 0x4a7   : > { %951 = vadd.xlane.f32.xlu1 %v950_v14 }
 0x4a8   : > { %v949_v21 = vadd.f32 %v1418_v20, %v939_v56 }
 0x4aa   : > { %v953_v57 = vsel %vm626_vm2, %v949_v21, 0.0 }
 0x4ab   : > { %954 = vadd.xlane.f32.xlu1 %v953_v57 }
 0x534   : > { %v952_v58 = vpop.xlane.xlu1 %951 }
 0x535   : > { %v956_v59 = vmul.f32 0.03125, %v952_v58 }
 0x537   : > { %v958_v60 = vsub.f32 %v948_v55, %v956_v59 }
 0x538   : > { %v955_v61 = vpop.xlane.xlu1 %954 }
 0x539   : > { %v957_v62 = vmul.f32 0.03125, %v955_v61  ;;  %v960_v63 = vmul.f32 %v958_v60, %v958_v60 }
 0x53b   : > { %v959_v0 = vsub.f32 %v949_v21, %v957_v62  ;;  %v962_v1 = vsel %vm626_vm2, %v960_v63, 0.0 }
 0x53c   : > { %963 = vadd.xlane.f32.xlu1 %v962_v1  ;;  %v1176_v1 = vld [vmem:[%s2118_s12] sm:$0xff] }
 0x53d   : > { %v961_v2 = vmul.f32 %v959_v0, %v959_v0 }
 0x53f   : > { %v965_v3 = vsel %vm626_vm2, %v961_v2, 0.0  ;;  %v1177_v2 = vld [vmem:[%s2118_s12 + $0x8] sm:$0xff] }
 0x540   : > { %966 = vadd.xlane.f32.xlu0 %v965_v3  ;;  %v1178_v3 = vld [vmem:[%s2118_s12 + $0x10] sm:$0xff]  ;;  %v1518_v4 = vpack.c.bf16 %v1177_v2, %v1176_v1 }
 0x541   : > { %v1522_v6 = vpack.c.bf16 %v1179_v5, %v1178_v3 }
 0x542   : > { %1519 = vmatprep.subr.bf16.mxu1 %v1518_v4 }
 0x543   : > { %1521 = vmatpush3.bf16.msra.mxu1 %v1518_v4 }
 0x544   : > { %1523 = vmatprep.subr.bf16.mxu1 %v1522_v6 }
 0x547   : > { %1525 = vmatpush3.bf16.msra.mxu1 %v1522_v6 }
 0x5c9   : > { %v964_v13 = vpop.xlane.xlu1 %963 }
 0x5ca   : > { %v968_v16 = vmul.f32 0.03125, %v964_v13 }
 0x5cc   : > { %v970_v17 = vadd.f32 1e-05, %v968_v16 }
 0x5cd   : > { %v967_v19 = vpop.xlane.xlu0 %966 }
 0x5ce   : > { %1616 = vrsqrt.f32 %v970_v17  ;;  %v969_v22 = vmul.f32 0.03125, %v967_v19 }
 0x5d0   : > { %v971_v23 = vadd.f32 1e-05, %v969_v22  ;;  %v1432_v22 = vld [vmem:[%s2116_s10 + $0x1] ss:$0 sm:$0xff] }
 0x5d2   : > { %1618 = vrsqrt.f32 %v971_v23 }
 0x5d8   : > { %v1617_v24 = vpop.eup %1616 }
 0x5d9   : > { %v974_v26 = vmul.f32 %v1617_v24, %v958_v60 }
 0x5db   : > { %v984_v28 = vmul.f32 %v1420_v25, %v974_v26 }
 0x5dc   : > { %v1619_v29 = vpop.eup %1618 }
 0x5dd   : > { %v994_v30 = vadd.f32 %v1422_v27, %v984_v28  ;;  %v975_v31 = vmul.f32 %v1619_v29, %v959_v0 }
 0x5df   : > { %v985_v33 = vmul.f32 %v1420_v25, %v975_v31  ;;  %v998_v34 = vmul.f32 0.044715, %v994_v30  ;;  %v996_v45 = vmul.f32 0.5, %v994_v30  ;;  %v1434_v25 = vld [vmem:[%s2117_s11 + $0x1] ss:$0 sm:$0xff] }
 0x5e1   : > { %v995_v35 = vadd.f32 %v1422_v27, %v985_v33  ;;  %v1000_v36 = vmul.f32 %v998_v34, %v994_v30 }
 0x5e3   : > { %v1002_v38 = vmul.f32 %v1000_v36, %v994_v30  ;;  %v999_v39 = vmul.f32 0.044715, %v995_v35  ;;  %v997_v49 = vmul.f32 0.5, %v995_v35 }
 0x5e5   : > { %v1004_v15 = vadd.f32 %v1002_v38, %v994_v30  ;;  %v1001_v40 = vmul.f32 %v999_v39, %v995_v35 }
 0x5e7   : > { %v1006_v41 = vmul.f32 0.7978846, %v1004_v15  ;;  %v1003_v42 = vmul.f32 %v1001_v40, %v995_v35 }
 0x5e9   : > { %1620 = vtanh.f32 %v1006_v41  ;;  %v1005_v43 = vadd.f32 %v1003_v42, %v995_v35 }
 0x5eb   : > { %v1007_v12 = vmul.f32 0.7978846, %v1005_v43 }
 0x5ed   : > { %1622 = vtanh.f32 %v1007_v12 }
 0x5f3   : > { %v1621_v44 = vpop.eup %1620 }
 0x5f4   : > { %v1010_v46 = vadd.f32 1.0, %v1621_v44 }
 0x5f6   : > { %v1012_v47 = vmul.f32 %v1010_v46, %v996_v45 }
 0x5f7   : > { %v1623_v48 = vpop.eup %1622 }
 0x5f8   : > { %1488 = vmatprep.mubr.msk.f32.mxu0 %vm626_vm2, %v1012_v47  ;;  %v1011_v50 = vadd.f32 1.0, %v1623_v48 }
 0x5fa   : > { %v1013_v51 = vmul.f32 %v1011_v50, %v997_v49 }
 0x5fc   : > { %1489 = vmatmul.mubr.msk.f32.vlgmr.msra.gmra.mrb[2].mxu0 %vm626_vm2, %v1013_v51 }
 0x6cf   : > { %v1490_v20 = vpop.f32.mrb[2].mxu0 }
 0x6d0   : > { %v1105_v18 = vadd.f32 %v1490_v20, %v1428_v52  ;;  %v1099_v53 = vpop.f32.mrb[3].mxu0  ;;  %v1435_v20 = vld [vmem:[%s2119_s13] ss:$0 sm:$0xff] }
 0x6d1   : > { %v1100_v54 = vadd.f32 %v1428_v52, %v1099_v53 }
 0x6d2   : > { %v1111_v55 = vsel %vm626_vm2, %v1105_v18, 0.0 }
 0x6d3   : > { %1112 = vadd.xlane.f32.xlu0 %v1111_v55  ;;  %v1108_v56 = vsel %vm626_vm2, %v1100_v54, 0.0 }
 0x6d4   : > { %1109 = vadd.xlane.f32.xlu1 %v1108_v56 }
 0x760   : > { %v1113_v14 = vpop.xlane.xlu0 %1112 }
 0x761   : > { %v1115_v21 = vmul.f32 0.03125, %v1113_v14  ;;  %v1110_v57 = vpop.xlane.xlu1 %1109 }
 0x762   : > { %v1114_v58 = vmul.f32 0.03125, %v1110_v57 }
 0x763   : > { %v1117_v59 = vsub.f32 %v1105_v18, %v1115_v21 }
 0x764   : > { %v1116_v60 = vsub.f32 %v1100_v54, %v1114_v58 }
 0x765   : > { %v1119_v61 = vmul.f32 %v1117_v59, %v1117_v59 }
 0x766   : > { %v1118_v62 = vmul.f32 %v1116_v60, %v1116_v60 }
 0x767   : > { %v1123_v63 = vsel %vm626_vm2, %v1119_v61, 0.0 }
 0x768   : > { %1124 = vadd.xlane.f32.xlu0 %v1123_v63  ;;  %v1120_v0 = vsel %vm626_vm2, %v1118_v62, 0.0 }
 0x769   : > { %1121 = vadd.xlane.f32.xlu1 %v1120_v0 }
 0x7f5   : > { %v1125_v8 = vpop.xlane.xlu0 %1124 }
 0x7f6   : > { %v1127_v9 = vmul.f32 0.03125, %v1125_v8  ;;  %v1122_v10 = vpop.xlane.xlu1 %1121 }
 0x7f7   : > { %v1126_v13 = vmul.f32 0.03125, %v1122_v10 }
 0x7f8   : > { %v1129_v16 = vadd.f32 1e-05, %v1127_v9 }
 0x7f9   : > { %v1128_v17 = vadd.f32 1e-05, %v1126_v13 }
 0x7fa   : > { %1624 = vrsqrt.f32 %v1129_v16 }
 0x7fb   : > { %1626 = vrsqrt.f32 %v1128_v17 }
 0x804   : > { %v1625_v19 = vpop.eup %1624 }
 0x805   : > { %v1627_v23 = vpop.eup %1626  ;;  %v1133_v24 = vmul.f32 %v1625_v19, %v1117_v59 }
 0x806   : > { %v1132_v26 = vmul.f32 %v1627_v23, %v1116_v60 }
 0x807   : > { %v1143_v27 = vmul.f32 %v1432_v22, %v1133_v24 }
 0x808   : > { %v1142_v28 = vmul.f32 %v1432_v22, %v1132_v26 }
 0x809   : > { %v1153_v29 = vadd.f32 %v1434_v25, %v1143_v27 }
 0x80a   : > { %v1152_v30 = vadd.f32 %v1434_v25, %v1142_v28 }
 0x80b   : > { %v1157_v31 = vmul.f32 0.044715, %v1153_v29  ;;  %v1155_v12 = vmul.f32 0.5, %v1153_v29 }
 0x80c   : > { %v1156_v33 = vmul.f32 0.044715, %v1152_v30  ;;  %v1154_v45 = vmul.f32 0.5, %v1152_v30 }
 0x80d   : > { %v1159_v34 = vmul.f32 %v1157_v31, %v1153_v29 }
 0x80e   : > { %v1158_v35 = vmul.f32 %v1156_v33, %v1152_v30 }
 0x80f   : > { %v1161_v36 = vmul.f32 %v1159_v34, %v1153_v29 }
 0x810   : > { %v1160_v38 = vmul.f32 %v1158_v35, %v1152_v30 }
 0x811   : > { %v1163_v39 = vadd.f32 %v1161_v36, %v1153_v29 }
 0x812   : > { %v1162_v15 = vadd.f32 %v1160_v38, %v1152_v30 }
 0x813   : > { %v1165_v40 = vmul.f32 0.7978846, %v1163_v39 }
 0x814   : > { %v1164_v41 = vmul.f32 0.7978846, %v1162_v15 }
 0x815   : > { %1628 = vtanh.f32 %v1165_v40 }
 0x816   : > { %1630 = vtanh.f32 %v1164_v41 }
 0x81f   : > { %v1629_v42 = vpop.eup %1628 }
 0x820   : > { %v1631_v43 = vpop.eup %1630  ;;  %v1169_v44 = vadd.f32 1.0, %v1629_v42 }
 0x821   : > { %v1168_v46 = vadd.f32 1.0, %v1631_v43 }
 0x822   : > { %v1171_v47 = vmul.f32 %v1169_v44, %v1155_v12 }
 0x823   : > { %v1170_v48 = vmul.f32 %v1168_v46, %v1154_v45 }
 0x824   : > { %v1173_v49 = vadd.f32 %v1171_v47, %v1970_v37 }
 0x825   : > { %v1172_v50 = vadd.f32 %v1170_v48, %v1964_v32 }
 0x826   : > { %v1175_v52 = vmul.f32 %v1173_v49, %v1897_v11 }
 0x827   : > { %v1174_v51 = vmul.f32 %v1172_v50, %v1892_v7 }
 0x829   : > { %1499 = vmatprep.mubr.msk.f32.mxu1 %vm626_vm2, %v1174_v51 }
 0x82a   : > { %1500 = vmatmul.mubr.msk.f32.vlgmr.msra.gmra.mrb[2].mxu1 %vm626_vm2, %v1175_v52 }
 0x8fd   : > { %v1501_v18 = vpop.f32.mrb[2].mxu1 }
 0x8fe   : > { %v1265_v37 = vadd.f32 %v1501_v18, %v1435_v20  ;;  %v1259_v53 = vpop.f32.mrb[3].mxu1 }
 0x8ff   : > { %v1260_v32 = vadd.f32 %v1435_v20, %v1259_v53 }
 0x900   : > { %v1269_v54 = vmul.f32 %v1265_v37, %v1897_v11 }
 0x901   : > { %v1268_v55 = vmul.f32 %v1260_v32, %v1892_v7 }
 0x902   : > { %1273 = vst.msk [vmem:[%s509_s23 + $0x4] sm:$0xf] %vm1272_vm4, %v1269_v54 }
 0x903   : > { %1271 = vst.msk [vmem:[%s509_s23 - $0x4] sm:$0xf0] %vm1270_vm5, %v1268_v55 }
 0x904   : > { %1645 = shalt.err (!%p1642_p7)
}
 0x905   : > { %s1646_s14 = scalar_lea.hbm %s2053_s22, 128  ;;  %s1650_s23 = scalar_lea.hbm %s2140_s24, 512 }
 0x906   : > { %p1647_p9 = scmp.ne.s32.totalorder %s2053_s22, %s1646_s14  ;;  %p1651_p12 = scmp.lt.u32.totalorder %s2053_s22, %s2140_s24 }
 0x907   : > { %p1652_p13 = scmp.lt.u32.totalorder %s1650_s23, %s1646_s14  ;;  %p1654_p1 = scmp.lt.u32.totalorder %s1646_s14, %s2053_s22 }
 0x908   : > { %p1648_p10 = pnand %p1647_p9, %p1857_p3 }
 0x909   : > { %p1653_p0 = por %p1652_p13, %p1651_p12 }
 0x90a   : > { %p1649_p11 = pneg %p1648_p10 }
 0x90b   : > { %p1655_p2 = por %p1654_p1, %p1653_p0 }
 0x90d   : > { %p1656_p4 = pnand %p1655_p2, %p1649_p11 }
 0x90f   : > { %1659 = shalt.err (!%p1656_p4)
}
 0x910   : > { %1526 = dma.vmem_to_hbm [thread:$0]  (%p1857_p3), %s2055_s15, 128, %s2053_s22, %s1275_s16  }
 0x911 PF: > { %s2141_s25 = sld [smem:[#allocation6_spill]]  ;;  %p1532_p5 = scmp.ge.s32.totalorder %s1726_s20, 2 }
 0x913   : > { %p1529_p6 = pnand %p1532_p5, %p1866_p8 }
 0x917   : > { %s1302_s28 = sand.u32 1, %s2141_s25  }
 0x918   : > { %s1303_s21 = scalar_lea.sflag [#allocation4], %s1302_s28 }
 0x919   : > { %1693 = dma.done.wait (!%p1529_p6), %s1303_s21, 128  }
 0x91a   : > { %1695 = vsyncadd (!%p1529_p6), %s1303_s21, 4294967168  ;;  %s27_s20 = sadd.s32 1, %s1726_s20   ;;  %s2142_s14 = sld [smem:[#allocation7_spill]] }
 0x91b   : > { %p24_p7 = scmp.ge.s32.totalorder %s27_s20, 6   ;;  %s2143_s15 = sld [smem:[#allocation12_spill]] }
 0x91c   : > { %s2144_s16 = sld [smem:[#allocation8_spill]]  ;;  %s2145_s17 = sld [smem:[#allocation9_spill]] }
 0x91d   : > { %s2146_s18 = sld [smem:[#allocation10_spill]]  ;;  %s2147_s19 = sld [smem:[#allocation11_spill]] }
 0x91e   : > { %s2148_s29 = smov %s1702_s30  ;;  %26 = sbr.rel (!%p24_p7) target bundleno = 8 (0x8), region = 122 }
 0x920   : > { %s2149_s30 = smov %s2142_s14 }
 0x925   :  { %1308 = vsyncpa [#allocation4], 1 }
 0x926   :  { %1310 = vsyncpa [#allocation4 + $0x1], 1 }

</bundles_post_ra>
